<compile_context>
chip_gen: v7x
topology: tpu7x:2x2x1
jax: 0.10.0
libtpu: 0.0.40
codegen_flags: <defaults>
</compile_context>

<pallas_src>
import jax
import jax.numpy as jnp
from jax.experimental import pallas as pl
from jax.experimental.pallas import tpu as pltpu


_MXU_K = 256                      # MXU contraction depth (v6e/v7x).
                                  # TODO(synk): 128 on v5e (query pltpu.get_tpu_info()).
_VMEM_LIMIT = 64 * 1024 * 1024    # raised from 32 MiB per review; sweep per chip.


def _round_up(x, m):
    return (x + m - 1) // m * m


def _pick_row_tile(H, W, c_in, c_fuse, c_out, row_tile=None,
                   budget_bytes=12 * 1024 * 1024, max_rows=64):
    """Largest even divisor of H whose per-step VMEM footprint fits the budget.

    TODO(synk): re-derive the budget per chip (v7x has only 64 MiB physical
    VMEM) instead of this fixed conservative estimate.
    """
    if row_tile is not None:
        assert row_tile % 2 == 0 and H % row_tile == 0, (H, row_tile)
        return row_tile
    wp = _round_up(W + 1, 8)

    def step_bytes(th):
        fine_in = 2 * th * W * c_in * 4              # double-buffered fine block
        coarse_in = 2 * (th // 2) * (W // 2) * c_fuse * 4
        out = 2 * th * W * c_out * 4
        scratch = (th + 2) * wp * c_fuse * 4         # padded fused map (f32)
        taps = 3 * th * wp * c_fuse * 4              # per-ky tap temporaries
        return fine_in + coarse_in + out + scratch + taps

    for th in range(min(H, max_rows), 1, -1):
        if th % 2 == 0 and H % th == 0 and step_bytes(th) <= budget_bytes:
            return th
    return 2 if H % 2 == 0 else H


# ----------------------------------------------------------------------------
# Fused pyramid-level kernel:
#   [coarse 1x1 lateral] + [fine 1x1 lateral] + nearest 2x upsample (H and W,
#   all in VMEM) + 'sum' fusion + 3x3 conv (pad=1, no bias) + folded BN + ReLU
# ----------------------------------------------------------------------------
def _make_fuse_kernel(has_fine_lat, has_coarse_lat, emit_lat, mxu_k=_MXU_K):

    def kernel(*refs):
        f_ref, ft_ref, fb_ref, c_ref, ct_ref, cb_ref = refs[:6]
        idx = 6
        if has_fine_lat:
            w1f_ref, b1f_ref = refs[idx:idx + 2]
            idx += 2
        if has_coarse_lat:
            w1c_ref, b1c_ref = refs[idx:idx + 2]
            idx += 2
        w9_ref, s_ref, t_ref = refs[idx:idx + 3]
        idx += 3
        o_ref = refs[idx]
        idx += 1
        if emit_lat:
            lat_ref = refs[idx]
            idx += 1
        fpad_ref = refs[idx]

        i = pl.program_id(1)              # row-tile index
        ntiles = pl.num_programs(1)

        TH, W, Cf = f_ref.shape[1], f_ref.shape[2], f_ref.shape[3]
        THc, Wc, Cc = c_ref.shape[1], c_ref.shape[2], c_ref.shape[3]
        Cout = w9_ref.shape[1]
        C = w9_ref.shape[0] // 9
        Wp = fpad_ref.shape[1]
        n = TH * Wp

        # ---- fine rows: tile + 1-row halos, lateral 1x1 (bf16 MXU) or identity
        xf_all = jnp.concatenate([ft_ref[0], f_ref[0], fb_ref[0]], axis=0)  # (TH+2,W,Cf)
        if has_fine_lat:
            lf_all = (jnp.dot(xf_all.reshape((TH + 2) * W, Cf).astype(jnp.bfloat16),
                              w1f_ref[...], preferred_element_type=jnp.float32)
                      + b1f_ref[0]).reshape(TH + 2, W, C)
        else:
            lf_all = xf_all.astype(jnp.float32)

        # ---- coarse rows: tile + 1-row halos, lateral 1x1 or identity
        xc_all = jnp.concatenate([ct_ref[0], c_ref[0], cb_ref[0]], axis=0)  # (THc+2,Wc,Cc)
        if has_coarse_lat:
            lc_all = (jnp.dot(xc_all.reshape((THc + 2) * Wc, Cc).astype(jnp.bfloat16),
                              w1c_ref[...], preferred_element_type=jnp.float32)
                      + b1c_ref[0]).reshape(THc + 2, Wc, C)
        else:
            lc_all = xc_all.astype(jnp.float32)

        if emit_lat:
            # The coarsest lateral is also a pyramid output (stored in act_dtype);
            # use the same rounded values for the fusion for exact consistency.
            lc_all = lc_all.astype(lat_ref.dtype).astype(jnp.float32)
            lat_ref[0] = lc_all[1:THc + 1].astype(lat_ref.dtype)

        # ---- nearest 2x upsample along W, entirely in VMEM (no HBM round trip).
        # Implemented with sublane-dim concatenation of column pairs only
        # (known-good lowering).  TODO(synk): for large Wc switch to a
        # broadcast+reshape interleave once the unaligned sublane-merge relayout
        # is verified on the target toolchain.
        cols = []
        for k in range(Wc):
            col = lc_all[:, k:k + 1, :]
            cols += [col, col]
        cu_all = jnp.concatenate(cols, axis=1)                      # (THc+2, W, C)

        # ---- nearest 2x upsample along H (broadcast over parity) + 'sum' fusion
        fused = (lf_all[1:TH + 1].reshape(THc, 2, W, C)
                 + cu_all[1:THc + 1][:, None, :, :]).reshape(TH, W, C)
        top = lf_all[0] + cu_all[0]                # fused row i*TH - 1
        bot = lf_all[TH + 1] + cu_all[THc + 1]     # fused row (i+1)*TH
        # at the image boundary the halo rows become the conv's zero padding
        top = top * (i > 0).astype(jnp.float32)
        bot = bot * (i < ntiles - 1).astype(jnp.float32)

        # ---- padded fused tile in persistent VMEM scratch (ref slice stores;
        #      Wp = round_up(W+1, 8) keeps the flatten below layout-preserving)
        fpad_ref[0:1, 0:W, :] = top[None]
        fpad_ref[1:TH + 1, 0:W, :] = fused
        fpad_ref[TH + 1:TH + 2, 0:W, :] = bot[None]
        fpad_ref[:, W:Wp, :] = jnp.zeros((TH + 2, Wp - W, C), jnp.float32)

        # ---- 3x3 conv: flatten rows (8-aligned Wp), +-1 column taps via
        #      pltpu.roll (wrap lands in the trailing zero columns), bf16 MXU
        #      operands with f32 accumulation.
        rows = [fpad_ref[ky:ky + TH, :, :].reshape(n, C) for ky in range(3)]

        def tap(ky, kx):
            a = rows[ky]
            if kx == 0:
                a = pltpu.roll(a, 1, 0)            # column x-1
            elif kx == 2:
                a = pltpu.roll(a, n - 1, 0)        # column x+1
            return a.astype(jnp.bfloat16)

        if 9 * C <= mxu_k:
            # tiny C: one im2col matmul (K = 9C) fills the MXU
            patches = jnp.concatenate(
                [tap(ky, kx) for ky in range(3) for kx in range(3)], axis=1)
            acc = jnp.dot(patches, w9_ref[...], preferred_element_type=jnp.float32)
        elif C < mxu_k:
            # mid C: one K = 3C matmul per kernel row
            acc = None
            for ky in range(3):
                blk = jnp.concatenate([tap(ky, kx) for kx in range(3)], axis=1)
                part = jnp.dot(blk, w9_ref[3 * ky * C:(3 * ky + 3) * C, :],
                               preferred_element_type=jnp.float32)
                acc = part if acc is None else acc + part
        else:
            # C at/above the MXU depth: pure per-tap accumulation, no lane
            # concatenation (frees VMEM, drops vst/VALU copy work, maps onto
            # MRB in-place accumulation on v7x).
            acc = None
            for ky in range(3):
                for kx in range(3):
                    off = (3 * ky + kx) * C
                    part = jnp.dot(tap(ky, kx), w9_ref[off:off + C, :],
                                   preferred_element_type=jnp.float32)
                    acc = part if acc is None else acc + part

        # folded BatchNorm (eval) + ReLU on the lane-dense flat accumulator;
        # halo columns are dropped only at the final store.
        y = jnp.maximum(acc * s_ref[0] + t_ref[0], 0.0)
        o_ref[0] = y.reshape(TH, Wp, Cout)[:, 0:W, :].astype(o_ref.dtype)

    return kernel


# ----------------------------------------------------------------------------
# Wrappers
# ----------------------------------------------------------------------------
def fuse_level(fine, coarse, out_params, fine_lateral=None, coarse_lateral=None,
               emit_coarse_lateral=False, act_dtype=jnp.bfloat16, row_tile=None):
    """out = ConvNormAct(lateral(fine) + nearest_up2(lateral(coarse))), one level.

    If emit_coarse_lateral, also returns lateral(coarse) (so the coarsest 1x1
    conv of the FPN never round-trips HBM on its own).
    """
    N, H, W, Cf = fine.shape
    Nc, Hc, Wc, Cc = coarse.shape
    assert N == Nc and (H, W) == (2 * Hc, 2 * Wc)
    assert not (emit_coarse_lateral and coarse_lateral is None)

    w9 = out_params["w9"]
    Cout = w9.shape[1]
    C = w9.shape[0] // 9
    assert fine_lateral is not None or Cf == C
    assert coarse_lateral is not None or Cc == C
    scale = out_params["scale"].reshape(1, Cout).astype(jnp.float32)
    shift = out_params["shift"].reshape(1, Cout).astype(jnp.float32)

    TH = _pick_row_tile(H, W, Cf, C, Cout, row_tile=row_tile)
    THc = TH // 2
    ntiles = H // TH
    Wp = _round_up(W + 1, 8)

    # Interior row tiles plus 1-row halos; halo row indices wrap (modulo) at the
    # image boundary and the kernel zero-masks them there.
    x_spec = pl.BlockSpec((1, TH, W, Cf), lambda b, i: (b, i, 0, 0))
    x_top = pl.BlockSpec((1, 1, W, Cf), lambda b, i: (b, (i * TH + H - 1) % H, 0, 0))
    x_bot = pl.BlockSpec((1, 1, W, Cf), lambda b, i: (b, ((i + 1) * TH) % H, 0, 0))
    c_spec = pl.BlockSpec((1, THc, Wc, Cc), lambda b, i: (b, i, 0, 0))
    c_top = pl.BlockSpec((1, 1, Wc, Cc), lambda b, i: (b, (i * THc + Hc - 1) % Hc, 0, 0))
    c_bot = pl.BlockSpec((1, 1, Wc, Cc), lambda b, i: (b, ((i + 1) * THc) % Hc, 0, 0))

    def full(shape):
        return pl.BlockSpec(shape, lambda b, i: (0,) * len(shape))

    args = [fine, fine, fine, coarse, coarse, coarse]
    specs = [x_spec, x_top, x_bot, c_spec, c_top, c_bot]
    flops = 2 * N * H * W * 9 * C * Cout
    if fine_lateral is not None:
        args += [fine_lateral["w"].astype(jnp.bfloat16),
                 fine_lateral["b"].reshape(1, C).astype(jnp.float32)]
        specs += [full((Cf, C)), full((1, C))]
        flops += 2 * N * H * W * Cf * C
    if coarse_lateral is not None:
        args += [coarse_lateral["w"].astype(jnp.bfloat16),
                 coarse_lateral["b"].reshape(1, C).astype(jnp.float32)]
        specs += [full((Cc, C)), full((1, C))]
        flops += 2 * N * Hc * Wc * Cc * C
    args += [w9.astype(jnp.bfloat16), scale, shift]
    specs += [full((9 * C, Cout)), full((1, Cout)), full((1, Cout))]

    act_bytes = jnp.dtype(act_dtype).itemsize
    out_shape = jax.ShapeDtypeStruct((N, H, W, Cout), act_dtype)
    out_spec = pl.BlockSpec((1, TH, W, Cout), lambda b, i: (b, i, 0, 0))
    bytes_accessed = (int(fine.size) * fine.dtype.itemsize
                      + int(coarse.size) * coarse.dtype.itemsize
                      + sum(int(a.size) * a.dtype.itemsize for a in args[6:])
                      + N * H * W * Cout * act_bytes)
    if emit_coarse_lateral:
        out_shape = (out_shape, jax.ShapeDtypeStruct((N, Hc, Wc, C), act_dtype))
        out_spec = (out_spec, pl.BlockSpec((1, THc, Wc, C), lambda b, i: (b, i, 0, 0)))
        bytes_accessed += N * Hc * Wc * C * act_bytes

    kernel = _make_fuse_kernel(fine_lateral is not None, coarse_lateral is not None,
                               emit_coarse_lateral)
    return pl.pallas_call(
        kernel,
        out_shape=out_shape,
        grid=(N, ntiles),
        in_specs=specs,
        out_specs=out_spec,
        scratch_shapes=[pltpu.VMEM((TH + 2, Wp, C), jnp.float32)],
        compiler_params=pltpu.CompilerParams(
            # both axes independent -> megacore can shard them even at N=1
            dimension_semantics=("parallel", "parallel"),
            vmem_limit_bytes=_VMEM_LIMIT),
        cost_estimate=pl.CostEstimate(flops=int(flops), transcendentals=0,
                                      bytes_accessed=int(bytes_accessed)),
    )(*args)


def _conv1x1_kernel(x_ref, w_ref, b_ref, o_ref):
    # Only used in the degenerate single-level FPN case.
    H, W, Cin = x_ref.shape[1], x_ref.shape[2], x_ref.shape[3]
    Cout = w_ref.shape[1]
    x = x_ref[0].reshape(H * W, Cin).astype(jnp.bfloat16)
    y = jnp.dot(x, w_ref[...], preferred_element_type=jnp.float32) + b_ref[0]
    o_ref[0] = y.reshape(H, W, Cout).astype(o_ref.dtype)


def conv1x1(x, w, b, act_dtype=jnp.bfloat16):
    N, H, W, Cin = x.shape
    Cout = w.shape[1]
    return pl.pallas_call(
        _conv1x1_kernel,
        out_shape=jax.ShapeDtypeStruct((N, H, W, Cout), act_dtype),
        grid=(N,),
        in_specs=[pl.BlockSpec((1, H, W, Cin), lambda n: (n, 0, 0, 0)),
                  pl.BlockSpec((Cin, Cout), lambda n: (0, 0)),
                  pl.BlockSpec((1, Cout), lambda n: (0, 0))],
        out_specs=pl.BlockSpec((1, H, W, Cout), lambda n: (n, 0, 0, 0)),
        compiler_params=pltpu.CompilerParams(
            dimension_semantics=("parallel",), vmem_limit_bytes=_VMEM_LIMIT),
    )(x, w.astype(jnp.bfloat16), b.reshape(1, Cout).astype(jnp.float32))


# ----------------------------------------------------------------------------
# FPN / PAN forward (parameters are plain pytrees)
# ----------------------------------------------------------------------------
def fpn_forward(xs, lateral_params, output_params, act_dtype=jnp.bfloat16,
                row_tile=None):
    outs = list(xs)
    if not output_params:
        if lateral_params[-1] is not None:
            lp = lateral_params[-1]
            outs[-1] = conv1x1(outs[-1], lp["w"], lp["b"], act_dtype)
        return outs
    # The provided snippet uses the FPN default top_down=True for both PAN
    # stages; we follow the snippet (same as the previous validated version).
    for i, op in enumerate(output_params):
        j = len(outs) - 2 - i
        coarse_lat = lateral_params[-1] if i == 0 else None
        emit = (i == 0) and (coarse_lat is not None)
        res = fuse_level(outs[j], outs[j + 1], op,
                         fine_lateral=lateral_params[j],
                         coarse_lateral=coarse_lat,
                         emit_coarse_lateral=emit,
                         act_dtype=act_dtype, row_tile=row_tile)
        if emit:
            outs[j], outs[-1] = res
        else:
            outs[j] = res
    return outs


def pan_forward(xs, params, act_dtype=jnp.bfloat16, row_tile=None):
    outs = fpn_forward(xs, params["td_lateral"], params["td_output"], act_dtype, row_tile)
    outs = fpn_forward(outs, params["bu_lateral"], params["bu_output"], act_dtype, row_tile)
    return outs


# ----------------------------------------------------------------------------
# Deterministic parameter construction
# ----------------------------------------------------------------------------
def make_conv_norm_act_params(key, cin, cout, eps=1e-5):
    k1, k2, k3, k4, k5 = jax.random.split(key, 5)
    w_oihw = 0.1 * jax.random.normal(k1, (cout, cin, 3, 3), jnp.float32)
    w_hwio = jnp.transpose(w_oihw, (2, 3, 1, 0))          # (3,3,cin,cout)
    w9 = w_hwio.reshape(9 * cin, cout)
    gamma = 1.0 + 0.1 * jax.random.normal(k2, (cout,), jnp.float32)
    beta = 0.1 * jax.random.normal(k3, (cout,), jnp.float32)
    mean = 0.1 * jax.random.normal(k4, (cout,), jnp.float32)
    var = 1.0 + 0.1 * jnp.abs(jax.random.normal(k5, (cout,), jnp.float32))
    scale = gamma / jnp.sqrt(var + eps)
    shift = beta - mean * scale
    return {"w9": w9, "scale": scale, "shift": shift}


def make_pan_params(key, in_channels_list, out_channels):
    keys = jax.random.split(key, 16)
    ki = iter(keys)
    td_lateral = []
    for in_c in in_channels_list:
        if in_c != out_channels:
            kw, kb = jax.random.split(next(ki))
            td_lateral.append({
                "w": 0.1 * jax.random.normal(kw, (in_c, out_channels), jnp.float32),
                "b": 0.1 * jax.random.normal(kb, (out_channels,), jnp.float32)})
        else:
            td_lateral.append(None)      # nn.Identity
    td_output = [make_conv_norm_act_params(next(ki), out_channels, out_channels)
                 for _ in range(len(in_channels_list) - 1)]
    bu_lateral = [None] * len(in_channels_list)
    bu_output = [make_conv_norm_act_params(next(ki), out_channels, out_channels)
                 for _ in range(len(in_channels_list) - 1)]
    return {"td_lateral": td_lateral, "td_output": td_output,
            "bu_lateral": bu_lateral, "bu_output": bu_output}


# ----------------------------------------------------------------------------
# Pure-JAX reference.  q=_q_bf16 mirrors the kernels' bf16 MXU-operand /
# bf16-storage policy (q=identity gives the pure f32 module semantics).
# ----------------------------------------------------------------------------
def _q_bf16(x):
    return x.astype(jnp.bfloat16).astype(jnp.float32)


def _identity(x):
    return x


def _ref_conv_norm_act(x, p, q=_identity):
    C = x.shape[-1]
    Cout = p["w9"].shape[1]
    w = q(p["w9"]).reshape(3, 3, C, Cout)
    y = jax.lax.conv_general_dilated(
        q(x), w, window_strides=(1, 1), padding=((1, 1), (1, 1)),
        dimension_numbers=("NHWC", "HWIO", "NHWC"))
    return jnp.maximum(y * p["scale"] + p["shift"], 0.0)


def _ref_fpn(xs, lateral_params, output_params, q=_identity):
    outs = list(xs)
    for k, lp in enumerate(lateral_params):
        if lp is not None:
            outs[k] = jnp.einsum("nhwc,cd->nhwd", q(outs[k]), q(lp["w"])) + lp["b"]
    if lateral_params[-1] is not None:
        outs[-1] = q(outs[-1])           # the kernel stores it to HBM in act_dtype
    for i, op in enumerate(output_params):
        j = len(outs) - 2 - i
        up = jnp.repeat(jnp.repeat(outs[j + 1], 2, axis=1), 2, axis=2)
        outs[j] = q(_ref_conv_norm_act(outs[j] + up, op, q))
    return outs


def _ref_pan(xs, params, q=_identity):
    outs = _ref_fpn(xs, params["td_lateral"], params["td_output"], q)
    outs = _ref_fpn(outs, params["bu_lateral"], params["bu_output"], q)
    return outs


# ----------------------------------------------------------------------------
if __name__ == "__main__":
    N = 2
    out_channels = 16
    in_channels_list = [8, 16, 32]
    spatial = [16, 8, 4]     # pyramid: each level is 2x coarser

    key = jax.random.PRNGKey(0)
    ks = jax.random.split(key, len(in_channels_list))
    xs = [jax.random.normal(ks[i], (N, spatial[i], spatial[i], in_channels_list[i]),
                            jnp.float32)
          for i in range(len(in_channels_list))]
    params = make_pan_params(jax.random.PRNGKey(42), in_channels_list, out_channels)

    # row_tile=4 forces several row tiles per level so the halo fetch / boundary
    # zero-masking logic is exercised even at these small demo shapes.
    outs = pan_forward(xs, params, act_dtype=jnp.bfloat16, row_tile=4)
    outs = [jax.block_until_ready(o) for o in outs]

    expected_shapes = [(N, s, s, out_channels) for s in spatial]
    assert [tuple(o.shape) for o in outs] == expected_shapes, \
        [tuple(o.shape) for o in outs]
    assert all(bool(jnp.all(jnp.isfinite(o.astype(jnp.float32)))) for o in outs)

    refs_q = _ref_pan(xs, params, q=_q_bf16)        # same bf16 policy as the kernels
    refs_f32 = _ref_pan(xs, params, q=_identity)    # pure f32 module semantics
    for o, rq, rf in zip(outs, refs_q, refs_f32):
        o32 = o.astype(jnp.float32)
        assert bool(jnp.allclose(o32, rq, rtol=2e-2, atol=2e-2)), \
            float(jnp.max(jnp.abs(o32 - rq)))
        assert bool(jnp.allclose(o32, rf, rtol=5e-2, atol=1e-1)), \
            float(jnp.max(jnp.abs(o32 - rf)))

    # Extra single-level checks exercising the per-ky (C=48) and per-tap
    # (C=256, at MXU depth) 3x3-conv branches with the default (single) row tile.
    for c_chk in (48, 256):
        kf, kc, kp = jax.random.split(jax.random.PRNGKey(c_chk), 3)
        fine = jax.random.normal(kf, (1, 8, 8, c_chk), jnp.float32)
        coarse = jax.random.normal(kc, (1, 4, 4, c_chk), jnp.float32)
        op = make_conv_norm_act_params(kp, c_chk, c_chk)
        out = jax.block_until_ready(fuse_level(fine, coarse, op))
        up = jnp.repeat(jnp.repeat(coarse, 2, axis=1), 2, axis=2)
        ref = _q_bf16(_ref_conv_norm_act(fine + up, op, _q_bf16))
        assert bool(jnp.allclose(out.astype(jnp.float32), ref, rtol=2e-2, atol=2e-2)), \
            float(jnp.max(jnp.abs(out.astype(jnp.float32) - ref)))

    print("KERNEL_OK")
</pallas_src>

<mosaic_0001>
module attributes {stable_mosaic.version = 11 : i64} {
  func.func @kernel(%arg0: i32, %arg1: i32, %arg2: memref<1x4x8x16xf32, #tpu.memory_space<vmem>>, %arg3: memref<1x1x8x16xf32, #tpu.memory_space<vmem>>, %arg4: memref<1x1x8x16xf32, #tpu.memory_space<vmem>>, %arg5: memref<1x2x4x32xf32, #tpu.memory_space<vmem>>, %arg6: memref<1x1x4x32xf32, #tpu.memory_space<vmem>>, %arg7: memref<1x1x4x32xf32, #tpu.memory_space<vmem>>, %arg8: memref<32x16xbf16, #tpu.memory_space<vmem>>, %arg9: memref<1x16xf32, #tpu.memory_space<vmem>>, %arg10: memref<144x16xbf16, #tpu.memory_space<vmem>>, %arg11: memref<1x16xf32, #tpu.memory_space<vmem>>, %arg12: memref<1x16xf32, #tpu.memory_space<vmem>>, %arg13: memref<1x4x8x16xbf16, #tpu.memory_space<vmem>>, %arg14: memref<1x2x4x16xbf16, #tpu.memory_space<vmem>>, %arg15: memref<6x16x16xf32, #tpu.memory_space<vmem>>) attributes {dimension_semantics = [#tpu.dimension_semantics<parallel>, #tpu.dimension_semantics<parallel>], iteration_bounds = array<i64: 2, 2>, scalar_prefetch = 0 : i64, scratch_operands = 1 : i64, tpu.core_type = #tpu.core_type<tc>, window_params = [{transform_indices = @transform_0, window_bounds = array<i64: 1, 4, 8, 16>}, {transform_indices = @transform_1, window_bounds = array<i64: 1, 1, 8, 16>}, {transform_indices = @transform_2, window_bounds = array<i64: 1, 1, 8, 16>}, {transform_indices = @transform_3, window_bounds = array<i64: 1, 2, 4, 32>}, {transform_indices = @transform_4, window_bounds = array<i64: 1, 1, 4, 32>}, {transform_indices = @transform_5, window_bounds = array<i64: 1, 1, 4, 32>}, {pipeline_mode = #tpu.pipeline_mode<synchronous>, transform_indices = @transform_6, window_bounds = array<i64: 32, 16>}, {pipeline_mode = #tpu.pipeline_mode<synchronous>, transform_indices = @transform_7, window_bounds = array<i64: 1, 16>}, {pipeline_mode = #tpu.pipeline_mode<synchronous>, transform_indices = @transform_8, window_bounds = array<i64: 144, 16>}, {pipeline_mode = #tpu.pipeline_mode<synchronous>, transform_indices = @transform_9, window_bounds = array<i64: 1, 16>}, {pipeline_mode = #tpu.pipeline_mode<synchronous>, transform_indices = @transform_10, window_bounds = array<i64: 1, 16>}, {transform_indices = @transform_11, window_bounds = array<i64: 1, 4, 8, 16>}, {transform_indices = @transform_12, window_bounds = array<i64: 1, 2, 4, 16>}]} {
    %c0 = arith.constant 0 : index
    %c0_0 = arith.constant 0 : index
    %c0_1 = arith.constant 0 : index
    %c0_2 = arith.constant 0 : index
    %0 = vector.load %arg3[%c0, %c0_0, %c0_1, %c0_2] : memref<1x1x8x16xf32, #tpu.memory_space<vmem>>, vector<1x1x8x16xf32>
    %1 = vector.shape_cast %0 : vector<1x1x8x16xf32> to vector<1x8x16xf32>
    %c0_3 = arith.constant 0 : index
    %c0_4 = arith.constant 0 : index
    %c0_5 = arith.constant 0 : index
    %c0_6 = arith.constant 0 : index
    %2 = vector.load %arg2[%c0_3, %c0_4, %c0_5, %c0_6] : memref<1x4x8x16xf32, #tpu.memory_space<vmem>>, vector<1x4x8x16xf32>
    %3 = vector.shape_cast %2 : vector<1x4x8x16xf32> to vector<4x8x16xf32>
    %c0_7 = arith.constant 0 : index
    %c0_8 = arith.constant 0 : index
    %c0_9 = arith.constant 0 : index
    %c0_10 = arith.constant 0 : index
    %4 = vector.load %arg4[%c0_7, %c0_8, %c0_9, %c0_10] : memref<1x1x8x16xf32, #tpu.memory_space<vmem>>, vector<1x1x8x16xf32>
    %5 = vector.shape_cast %4 : vector<1x1x8x16xf32> to vector<1x8x16xf32>
    %6 = tpu.concatenate %1, %3, %5 in 0 : vector<1x8x16xf32>, vector<4x8x16xf32>, vector<1x8x16xf32> -> vector<6x8x16xf32>
    %c0_11 = arith.constant 0 : index
    %c0_12 = arith.constant 0 : index
    %c0_13 = arith.constant 0 : index
    %c0_14 = arith.constant 0 : index
    %7 = vector.load %arg6[%c0_11, %c0_12, %c0_13, %c0_14] : memref<1x1x4x32xf32, #tpu.memory_space<vmem>>, vector<1x1x4x32xf32>
    %8 = vector.shape_cast %7 : vector<1x1x4x32xf32> to vector<1x4x32xf32>
    %c0_15 = arith.constant 0 : index
    %c0_16 = arith.constant 0 : index
    %c0_17 = arith.constant 0 : index
    %c0_18 = arith.constant 0 : index
    %9 = vector.load %arg5[%c0_15, %c0_16, %c0_17, %c0_18] : memref<1x2x4x32xf32, #tpu.memory_space<vmem>>, vector<1x2x4x32xf32>
    %10 = vector.shape_cast %9 : vector<1x2x4x32xf32> to vector<2x4x32xf32>
    %c0_19 = arith.constant 0 : index
    %c0_20 = arith.constant 0 : index
    %c0_21 = arith.constant 0 : index
    %c0_22 = arith.constant 0 : index
    %11 = vector.load %arg7[%c0_19, %c0_20, %c0_21, %c0_22] : memref<1x1x4x32xf32, #tpu.memory_space<vmem>>, vector<1x1x4x32xf32>
    %12 = vector.shape_cast %11 : vector<1x1x4x32xf32> to vector<1x4x32xf32>
    %13 = tpu.concatenate %8, %10, %12 in 0 : vector<1x4x32xf32>, vector<2x4x32xf32>, vector<1x4x32xf32> -> vector<4x4x32xf32>
    %14 = vector.shape_cast %13 : vector<4x4x32xf32> to vector<16x32xf32>
    %15 = arith.truncf %14 : vector<16x32xf32> to vector<16x32xbf16>
    %c0_23 = arith.constant 0 : index
    %c0_24 = arith.constant 0 : index
    %16 = vector.load %arg8[%c0_23, %c0_24] : memref<32x16xbf16, #tpu.memory_space<vmem>>, vector<32x16xbf16>
    %cst = arith.constant dense<0.000000e+00> : vector<16x16xf32>
    %17 = tpu.matmul %15, %16, %cst {dimension_numbers = #tpu.dot_dimension_numbers<[1], [0], [0], [1], [0, 0, 1, 1], [], []>} : vector<16x32xbf16>, vector<32x16xbf16>, vector<16x16xf32> -> vector<16x16xf32>
    %c0_25 = arith.constant 0 : index
    %c0_26 = arith.constant 0 : index
    %18 = vector.load %arg9[%c0_25, %c0_26] : memref<1x16xf32, #tpu.memory_space<vmem>>, vector<1x16xf32>
    %19 = vector.shape_cast %18 : vector<1x16xf32> to vector<16xf32>
    %20 = vector.shape_cast %19 : vector<16xf32> to vector<1x16xf32>
    %21 = vector.broadcast %20 : vector<1x16xf32> to vector<16x16xf32>
    %22 = arith.addf %17, %21 : vector<16x16xf32>
    %23 = vector.shape_cast %22 : vector<16x16xf32> to vector<4x4x16xf32>
    %24 = arith.truncf %23 : vector<4x4x16xf32> to vector<4x4x16xbf16>
    %25 = arith.extf %24 : vector<4x4x16xbf16> to vector<4x4x16xf32>
    %26 = vector.extract_strided_slice %25 {offsets = [1, 0, 0], sizes = [2, 4, 16], strides = [1, 1, 1]} : vector<4x4x16xf32> to vector<2x4x16xf32>
    %27 = arith.truncf %26 : vector<2x4x16xf32> to vector<2x4x16xbf16>
    %c0_27 = arith.constant 0 : index
    %c0_28 = arith.constant 0 : index
    %c0_29 = arith.constant 0 : index
    %c0_30 = arith.constant 0 : index
    %28 = vector.load %arg14[%c0_27, %c0_28, %c0_29, %c0_30] : memref<1x2x4x16xbf16, #tpu.memory_space<vmem>>, vector<1x2x4x16xbf16>
    %29 = vector.shape_cast %28 : vector<1x2x4x16xbf16> to vector<2x4x16xbf16>
    %30 = vector.shape_cast %27 : vector<2x4x16xbf16> to vector<1x2x4x16xbf16>
    tpu.vector_store %arg14[%c0_27, %c0_28, %c0_29, %c0_30], %30 {strides = array<i32>} : memref<1x2x4x16xbf16, #tpu.memory_space<vmem>>, vector<1x2x4x16xbf16>,
    %31 = vector.extract_strided_slice %25 {offsets = [0, 0, 0], sizes = [4, 1, 16], strides = [1, 1, 1]} : vector<4x4x16xf32> to vector<4x1x16xf32>
    %32 = vector.extract_strided_slice %25 {offsets = [0, 1, 0], sizes = [4, 1, 16], strides = [1, 1, 1]} : vector<4x4x16xf32> to vector<4x1x16xf32>
    %33 = vector.extract_strided_slice %25 {offsets = [0, 2, 0], sizes = [4, 1, 16], strides = [1, 1, 1]} : vector<4x4x16xf32> to vector<4x1x16xf32>
    %34 = vector.extract_strided_slice %25 {offsets = [0, 3, 0], sizes = [4, 1, 16], strides = [1, 1, 1]} : vector<4x4x16xf32> to vector<4x1x16xf32>
    %35 = tpu.concatenate %31, %31, %32, %32, %33, %33, %34, %34 in 1 : vector<4x1x16xf32>, vector<4x1x16xf32>, vector<4x1x16xf32>, vector<4x1x16xf32>, vector<4x1x16xf32>, vector<4x1x16xf32>, vector<4x1x16xf32>, vector<4x1x16xf32> -> vector<4x8x16xf32>
    %36 = vector.extract_strided_slice %6 {offsets = [1, 0, 0], sizes = [4, 8, 16], strides = [1, 1, 1]} : vector<6x8x16xf32> to vector<4x8x16xf32>
    %37 = vector.shape_cast %36 : vector<4x8x16xf32> to vector<2x2x8x16xf32>
    %38 = vector.extract_strided_slice %35 {offsets = [1, 0, 0], sizes = [2, 8, 16], strides = [1, 1, 1]} : vector<4x8x16xf32> to vector<2x8x16xf32>
    %39 = vector.shape_cast %38 : vector<2x8x16xf32> to vector<2x1x8x16xf32>
    %40 = vector.broadcast %39 : vector<2x1x8x16xf32> to vector<2x2x8x16xf32>
    %41 = arith.addf %37, %40 : vector<2x2x8x16xf32>
    %42 = vector.shape_cast %41 : vector<2x2x8x16xf32> to vector<4x8x16xf32>
    %43 = vector.extract_strided_slice %6 {offsets = [0, 0, 0], sizes = [1, 8, 16], strides = [1, 1, 1]} : vector<6x8x16xf32> to vector<1x8x16xf32>
    %44 = vector.shape_cast %43 : vector<1x8x16xf32> to vector<8x16xf32>
    %45 = vector.extract_strided_slice %35 {offsets = [0, 0, 0], sizes = [1, 8, 16], strides = [1, 1, 1]} : vector<4x8x16xf32> to vector<1x8x16xf32>
    %46 = vector.shape_cast %45 : vector<1x8x16xf32> to vector<8x16xf32>
    %47 = arith.addf %44, %46 : vector<8x16xf32>
    %48 = vector.extract_strided_slice %6 {offsets = [5, 0, 0], sizes = [1, 8, 16], strides = [1, 1, 1]} : vector<6x8x16xf32> to vector<1x8x16xf32>
    %49 = vector.shape_cast %48 : vector<1x8x16xf32> to vector<8x16xf32>
    %50 = vector.extract_strided_slice %35 {offsets = [3, 0, 0], sizes = [1, 8, 16], strides = [1, 1, 1]} : vector<4x8x16xf32> to vector<1x8x16xf32>
    %51 = vector.shape_cast %50 : vector<1x8x16xf32> to vector<8x16xf32>
    %52 = arith.addf %49, %51 : vector<8x16xf32>
    %c0_i32 = arith.constant 0 : i32
    %53 = arith.cmpi sgt, %arg1, %c0_i32 : i32
    %54 = arith.extui %53 : i1 to i32
    %55 = arith.sitofp %54 : i32 to f32
    %56 = vector.broadcast %55 : f32 to vector<8x16xf32>
    %57 = arith.mulf %47, %56 : vector<8x16xf32>
    %c1_i32 = arith.constant 1 : i32
    %58 = arith.cmpi slt, %arg1, %c1_i32 : i32
    %59 = arith.extui %58 : i1 to i32
    %60 = arith.sitofp %59 : i32 to f32
    %61 = vector.broadcast %60 : f32 to vector<8x16xf32>
    %62 = arith.mulf %52, %61 : vector<8x16xf32>
    %63 = vector.shape_cast %57 : vector<8x16xf32> to vector<1x8x16xf32>
    %c0_31 = arith.constant 0 : index
    %c0_32 = arith.constant 0 : index
    %c0_33 = arith.constant 0 : index
    %64 = vector.load %arg15[%c0_31, %c0_32, %c0_33] : memref<6x16x16xf32, #tpu.memory_space<vmem>>, vector<1x8x16xf32>
    tpu.vector_store %arg15[%c0_31, %c0_32, %c0_33], %63 {strides = array<i32>} : memref<6x16x16xf32, #tpu.memory_space<vmem>>, vector<1x8x16xf32>,
    %c1 = arith.constant 1 : index
    %c0_34 = arith.constant 0 : index
    %c0_35 = arith.constant 0 : index
    %65 = vector.load %arg15[%c1, %c0_34, %c0_35] : memref<6x16x16xf32, #tpu.memory_space<vmem>>, vector<4x8x16xf32>
    tpu.vector_store %arg15[%c1, %c0_34, %c0_35], %42 {strides = array<i32>} : memref<6x16x16xf32, #tpu.memory_space<vmem>>, vector<4x8x16xf32>,
    %66 = vector.shape_cast %62 : vector<8x16xf32> to vector<1x8x16xf32>
    %c5 = arith.constant 5 : index
    %c0_36 = arith.constant 0 : index
    %c0_37 = arith.constant 0 : index
    %67 = vector.load %arg15[%c5, %c0_36, %c0_37] : memref<6x16x16xf32, #tpu.memory_space<vmem>>, vector<1x8x16xf32>
    tpu.vector_store %arg15[%c5, %c0_36, %c0_37], %66 {strides = array<i32>} : memref<6x16x16xf32, #tpu.memory_space<vmem>>, vector<1x8x16xf32>,
    %cst_38 = arith.constant 0.000000e+00 : f32
    %68 = vector.broadcast %cst_38 : f32 to vector<6x8x16xf32>
    %c0_39 = arith.constant 0 : index
    %c8 = arith.constant 8 : index
    %c0_40 = arith.constant 0 : index
    %69 = vector.load %arg15[%c0_39, %c8, %c0_40] : memref<6x16x16xf32, #tpu.memory_space<vmem>>, vector<6x8x16xf32>
    tpu.vector_store %arg15[%c0_39, %c8, %c0_40], %68 {strides = array<i32>} : memref<6x16x16xf32, #tpu.memory_space<vmem>>, vector<6x8x16xf32>,
    %c0_41 = arith.constant 0 : index
    %c0_42 = arith.constant 0 : index
    %c0_43 = arith.constant 0 : index
    %70 = vector.load %arg15[%c0_41, %c0_42, %c0_43] : memref<6x16x16xf32, #tpu.memory_space<vmem>>, vector<4x16x16xf32>
    %71 = vector.shape_cast %70 : vector<4x16x16xf32> to vector<64x16xf32>
    %c1_44 = arith.constant 1 : index
    %c0_45 = arith.constant 0 : index
    %c0_46 = arith.constant 0 : index
    %72 = vector.load %arg15[%c1_44, %c0_45, %c0_46] : memref<6x16x16xf32, #tpu.memory_space<vmem>>, vector<4x16x16xf32>
    %73 = vector.shape_cast %72 : vector<4x16x16xf32> to vector<64x16xf32>
    %c2 = arith.constant 2 : index
    %c0_47 = arith.constant 0 : index
    %c0_48 = arith.constant 0 : index
    %74 = vector.load %arg15[%c2, %c0_47, %c0_48] : memref<6x16x16xf32, #tpu.memory_space<vmem>>, vector<4x16x16xf32>
    %75 = vector.shape_cast %74 : vector<4x16x16xf32> to vector<64x16xf32>
    %c1_i32_49 = arith.constant 1 : i32
    %76 = tpu.dynamic_rotate %71 by %c1_i32_49 dim 0 : vector<64x16xf32>, i32 -> vector<64x16xf32>
    %77 = arith.truncf %76 : vector<64x16xf32> to vector<64x16xbf16>
    %78 = arith.truncf %71 : vector<64x16xf32> to vector<64x16xbf16>
    %c63_i32 = arith.constant 63 : i32
    %79 = tpu.dynamic_rotate %71 by %c63_i32 dim 0 : vector<64x16xf32>, i32 -> vector<64x16xf32>
    %80 = arith.truncf %79 : vector<64x16xf32> to vector<64x16xbf16>
    %c1_i32_50 = arith.constant 1 : i32
    %81 = tpu.dynamic_rotate %73 by %c1_i32_50 dim 0 : vector<64x16xf32>, i32 -> vector<64x16xf32>
    %82 = arith.truncf %81 : vector<64x16xf32> to vector<64x16xbf16>
    %83 = arith.truncf %73 : vector<64x16xf32> to vector<64x16xbf16>
    %c63_i32_51 = arith.constant 63 : i32
    %84 = tpu.dynamic_rotate %73 by %c63_i32_51 dim 0 : vector<64x16xf32>, i32 -> vector<64x16xf32>
    %85 = arith.truncf %84 : vector<64x16xf32> to vector<64x16xbf16>
    %c1_i32_52 = arith.constant 1 : i32
    %86 = tpu.dynamic_rotate %75 by %c1_i32_52 dim 0 : vector<64x16xf32>, i32 -> vector<64x16xf32>
    %87 = arith.truncf %86 : vector<64x16xf32> to vector<64x16xbf16>
    %88 = arith.truncf %75 : vector<64x16xf32> to vector<64x16xbf16>
    %c63_i32_53 = arith.constant 63 : i32
    %89 = tpu.dynamic_rotate %75 by %c63_i32_53 dim 0 : vector<64x16xf32>, i32 -> vector<64x16xf32>
    %90 = arith.truncf %89 : vector<64x16xf32> to vector<64x16xbf16>
    %91 = tpu.concatenate %77, %78, %80, %82, %83, %85, %87, %88, %90 in 1 : vector<64x16xbf16>, vector<64x16xbf16>, vector<64x16xbf16>, vector<64x16xbf16>, vector<64x16xbf16>, vector<64x16xbf16>, vector<64x16xbf16>, vector<64x16xbf16>, vector<64x16xbf16> -> vector<64x144xbf16>
    %c0_54 = arith.constant 0 : index
    %c0_55 = arith.constant 0 : index
    %92 = vector.load %arg10[%c0_54, %c0_55] : memref<144x16xbf16, #tpu.memory_space<vmem>>, vector<144x16xbf16>
    %cst_56 = arith.constant dense<0.000000e+00> : vector<64x16xf32>
    %93 = tpu.matmul %91, %92, %cst_56 {dimension_numbers = #tpu.dot_dimension_numbers<[1], [0], [0], [1], [0, 0, 1, 1], [], []>} : vector<64x144xbf16>, vector<144x16xbf16>, vector<64x16xf32> -> vector<64x16xf32>
    %c0_57 = arith.constant 0 : index
    %c0_58 = arith.constant 0 : index
    %94 = vector.load %arg11[%c0_57, %c0_58] : memref<1x16xf32, #tpu.memory_space<vmem>>, vector<1x16xf32>
    %95 = vector.shape_cast %94 : vector<1x16xf32> to vector<16xf32>
    %96 = vector.shape_cast %95 : vector<16xf32> to vector<1x16xf32>
    %97 = vector.broadcast %96 : vector<1x16xf32> to vector<64x16xf32>
    %98 = arith.mulf %93, %97 : vector<64x16xf32>
    %c0_59 = arith.constant 0 : index
    %c0_60 = arith.constant 0 : index
    %99 = vector.load %arg12[%c0_59, %c0_60] : memref<1x16xf32, #tpu.memory_space<vmem>>, vector<1x16xf32>
    %100 = vector.shape_cast %99 : vector<1x16xf32> to vector<16xf32>
    %101 = vector.shape_cast %100 : vector<16xf32> to vector<1x16xf32>
    %102 = vector.broadcast %101 : vector<1x16xf32> to vector<64x16xf32>
    %103 = arith.addf %98, %102 : vector<64x16xf32>
    %cst_61 = arith.constant 0.000000e+00 : f32
    %104 = vector.broadcast %cst_61 : f32 to vector<64x16xf32>
    %105 = arith.maximumf %103, %104 : vector<64x16xf32>
    %106 = vector.shape_cast %105 : vector<64x16xf32> to vector<4x16x16xf32>
    %107 = vector.extract_strided_slice %106 {offsets = [0, 0, 0], sizes = [4, 8, 16], strides = [1, 1, 1]} : vector<4x16x16xf32> to vector<4x8x16xf32>
    %108 = arith.truncf %107 : vector<4x8x16xf32> to vector<4x8x16xbf16>
    %c0_62 = arith.constant 0 : index
    %c0_63 = arith.constant 0 : index
    %c0_64 = arith.constant 0 : index
    %c0_65 = arith.constant 0 : index
    %109 = vector.load %arg13[%c0_62, %c0_63, %c0_64, %c0_65] : memref<1x4x8x16xbf16, #tpu.memory_space<vmem>>, vector<1x4x8x16xbf16>
    %110 = vector.shape_cast %109 : vector<1x4x8x16xbf16> to vector<4x8x16xbf16>
    %111 = vector.shape_cast %108 : vector<4x8x16xbf16> to vector<1x4x8x16xbf16>
    tpu.vector_store %arg13[%c0_62, %c0_63, %c0_64, %c0_65], %111 {strides = array<i32>} : memref<1x4x8x16xbf16, #tpu.memory_space<vmem>>, vector<1x4x8x16xbf16>,
    return
  }
  func.func @transform_0(%arg0: i32, %arg1: i32) -> (i32, i32, i32, i32) {
    %c0_i32 = arith.constant 0 : i32
    %c0_i32_0 = arith.constant 0 : i32
    %c0_i32_1 = arith.constant 0 : i32
    return %arg0, %arg1, %c0_i32, %c0_i32_0 : i32, i32, i32, i32
  }
  func.func @transform_1(%arg0: i32, %arg1: i32) -> (i32, i32, i32, i32) {
    %c4_i32 = arith.constant 4 : i32
    %0 = arith.muli %arg1, %c4_i32 : i32
    %c8_i32 = arith.constant 8 : i32
    %1 = arith.addi %0, %c8_i32 : i32
    %c1_i32 = arith.constant 1 : i32
    %2 = arith.subi %1, %c1_i32 : i32
    %c8_i32_0 = arith.constant 8 : i32
    %c0_i32 = arith.constant 0 : i32
    %3 = arith.cmpi eq, %c8_i32_0, %c0_i32 : i32
    %c1_i32_1 = arith.constant 1 : i32
    %4 = arith.select %3, %c1_i32_1, %c8_i32_0 : i32
    %5 = arith.remsi %2, %4 : i32
    %c0_i32_2 = arith.constant 0 : i32
    %6 = arith.cmpi ne, %5, %c0_i32_2 : i32
    %c0_i32_3 = arith.constant 0 : i32
    %7 = arith.cmpi slt, %5, %c0_i32_3 : i32
    %c0_i32_4 = arith.constant 0 : i32
    %8 = arith.cmpi slt, %4, %c0_i32_4 : i32
    %9 = arith.xori %7, %8 : i1
    %10 = arith.andi %9, %6 : i1
    %11 = arith.addi %5, %4 : i32
    %12 = arith.select %10, %11, %5 : i32
    %c0_i32_5 = arith.constant 0 : i32
    %c0_i32_6 = arith.constant 0 : i32
    %c0_i32_7 = arith.constant 0 : i32
    return %arg0, %12, %c0_i32_5, %c0_i32_6 : i32, i32, i32, i32
  }
  func.func @transform_2(%arg0: i32, %arg1: i32) -> (i32, i32, i32, i32) {
    %c1_i32 = arith.constant 1 : i32
    %0 = arith.addi %arg1, %c1_i32 : i32
    %c4_i32 = arith.constant 4 : i32
    %1 = arith.muli %0, %c4_i32 : i32
    %c8_i32 = arith.constant 8 : i32
    %c0_i32 = arith.constant 0 : i32
    %2 = arith.cmpi eq, %c8_i32, %c0_i32 : i32
    %c1_i32_0 = arith.constant 1 : i32
    %3 = arith.select %2, %c1_i32_0, %c8_i32 : i32
    %4 = arith.remsi %1, %3 : i32
    %c0_i32_1 = arith.constant 0 : i32
    %5 = arith.cmpi ne, %4, %c0_i32_1 : i32
    %c0_i32_2 = arith.constant 0 : i32
    %6 = arith.cmpi slt, %4, %c0_i32_2 : i32
    %c0_i32_3 = arith.constant 0 : i32
    %7 = arith.cmpi slt, %3, %c0_i32_3 : i32
    %8 = arith.xori %6, %7 : i1
    %9 = arith.andi %8, %5 : i1
    %10 = arith.addi %4, %3 : i32
    %11 = arith.select %9, %10, %4 : i32
    %c0_i32_4 = arith.constant 0 : i32
    %c0_i32_5 = arith.constant 0 : i32
    %c0_i32_6 = arith.constant 0 : i32
    return %arg0, %11, %c0_i32_4, %c0_i32_5 : i32, i32, i32, i32
  }
  func.func @transform_3(%arg0: i32, %arg1: i32) -> (i32, i32, i32, i32) {
    %c0_i32 = arith.constant 0 : i32
    %c0_i32_0 = arith.constant 0 : i32
    %c0_i32_1 = arith.constant 0 : i32
    return %arg0, %arg1, %c0_i32, %c0_i32_0 : i32, i32, i32, i32
  }
  func.func @transform_4(%arg0: i32, %arg1: i32) -> (i32, i32, i32, i32) {
    %c2_i32 = arith.constant 2 : i32
    %0 = arith.muli %arg1, %c2_i32 : i32
    %c4_i32 = arith.constant 4 : i32
    %1 = arith.addi %0, %c4_i32 : i32
    %c1_i32 = arith.constant 1 : i32
    %2 = arith.subi %1, %c1_i32 : i32
    %c4_i32_0 = arith.constant 4 : i32
    %c0_i32 = arith.constant 0 : i32
    %3 = arith.cmpi eq, %c4_i32_0, %c0_i32 : i32
    %c1_i32_1 = arith.constant 1 : i32
    %4 = arith.select %3, %c1_i32_1, %c4_i32_0 : i32
    %5 = arith.remsi %2, %4 : i32
    %c0_i32_2 = arith.constant 0 : i32
    %6 = arith.cmpi ne, %5, %c0_i32_2 : i32
    %c0_i32_3 = arith.constant 0 : i32
    %7 = arith.cmpi slt, %5, %c0_i32_3 : i32
    %c0_i32_4 = arith.constant 0 : i32
    %8 = arith.cmpi slt, %4, %c0_i32_4 : i32
    %9 = arith.xori %7, %8 : i1
    %10 = arith.andi %9, %6 : i1
    %11 = arith.addi %5, %4 : i32
    %12 = arith.select %10, %11, %5 : i32
    %c0_i32_5 = arith.constant 0 : i32
    %c0_i32_6 = arith.constant 0 : i32
    %c0_i32_7 = arith.constant 0 : i32
    return %arg0, %12, %c0_i32_5, %c0_i32_6 : i32, i32, i32, i32
  }
  func.func @transform_5(%arg0: i32, %arg1: i32) -> (i32, i32, i32, i32) {
    %c1_i32 = arith.constant 1 : i32
    %0 = arith.addi %arg1, %c1_i32 : i32
    %c2_i32 = arith.constant 2 : i32
    %1 = arith.muli %0, %c2_i32 : i32
    %c4_i32 = arith.constant 4 : i32
    %c0_i32 = arith.constant 0 : i32
    %2 = arith.cmpi eq, %c4_i32, %c0_i32 : i32
    %c1_i32_0 = arith.constant 1 : i32
    %3 = arith.select %2, %c1_i32_0, %c4_i32 : i32
    %4 = arith.remsi %1, %3 : i32
    %c0_i32_1 = arith.constant 0 : i32
    %5 = arith.cmpi ne, %4, %c0_i32_1 : i32
    %c0_i32_2 = arith.constant 0 : i32
    %6 = arith.cmpi slt, %4, %c0_i32_2 : i32
    %c0_i32_3 = arith.constant 0 : i32
    %7 = arith.cmpi slt, %3, %c0_i32_3 : i32
    %8 = arith.xori %6, %7 : i1
    %9 = arith.andi %8, %5 : i1
    %10 = arith.addi %4, %3 : i32
    %11 = arith.select %9, %10, %4 : i32
    %c0_i32_4 = arith.constant 0 : i32
    %c0_i32_5 = arith.constant 0 : i32
    %c0_i32_6 = arith.constant 0 : i32
    return %arg0, %11, %c0_i32_4, %c0_i32_5 : i32, i32, i32, i32
  }
  func.func @transform_6(%arg0: i32, %arg1: i32) -> (i32, i32) {
    %c0_i32 = arith.constant 0 : i32
    %c0_i32_0 = arith.constant 0 : i32
    %c0_i32_1 = arith.constant 0 : i32
    return %c0_i32, %c0_i32_0 : i32, i32
  }
  func.func @transform_7(%arg0: i32, %arg1: i32) -> (i32, i32) {
    %c0_i32 = arith.constant 0 : i32
    %c0_i32_0 = arith.constant 0 : i32
    %c0_i32_1 = arith.constant 0 : i32
    return %c0_i32, %c0_i32_0 : i32, i32
  }
  func.func @transform_8(%arg0: i32, %arg1: i32) -> (i32, i32) {
    %c0_i32 = arith.constant 0 : i32
    %c0_i32_0 = arith.constant 0 : i32
    %c0_i32_1 = arith.constant 0 : i32
    return %c0_i32, %c0_i32_0 : i32, i32
  }
  func.func @transform_9(%arg0: i32, %arg1: i32) -> (i32, i32) {
    %c0_i32 = arith.constant 0 : i32
    %c0_i32_0 = arith.constant 0 : i32
    %c0_i32_1 = arith.constant 0 : i32
    return %c0_i32, %c0_i32_0 : i32, i32
  }
  func.func @transform_10(%arg0: i32, %arg1: i32) -> (i32, i32) {
    %c0_i32 = arith.constant 0 : i32
    %c0_i32_0 = arith.constant 0 : i32
    %c0_i32_1 = arith.constant 0 : i32
    return %c0_i32, %c0_i32_0 : i32, i32
  }
  func.func @transform_11(%arg0: i32, %arg1: i32) -> (i32, i32, i32, i32) {
    %c0_i32 = arith.constant 0 : i32
    %c0_i32_0 = arith.constant 0 : i32
    %c0_i32_1 = arith.constant 0 : i32
    return %arg0, %arg1, %c0_i32, %c0_i32_0 : i32, i32, i32, i32
  }
  func.func @transform_12(%arg0: i32, %arg1: i32) -> (i32, i32, i32, i32) {
    %c0_i32 = arith.constant 0 : i32
    %c0_i32_0 = arith.constant 0 : i32
    %c0_i32_1 = arith.constant 0 : i32
    return %arg0, %arg1, %c0_i32, %c0_i32_0 : i32, i32, i32, i32
  }
}

</mosaic_0001>

<bundles_post_ra>
// kernel: tpu_custom_call.1
= control target key start
LH: loop header
LB: loop body
LE: loop exit
PB: predicated region body
PF: predicated region fallthrough
CT: control target
= control target key end

     0   :  { %s4376_s0 = inlined_call_operand.hbm [shape: f32[2,8,8,16], index: 0, kind: input, shape index: {}]   ;;  %s4377_s1 = inlined_call_operand.hbm [shape: f32[2,8,8,16], index: 1, kind: input, shape index: {}]   ;;  %s4378_s2 = inlined_call_operand.hbm [shape: f32[2,8,8,16], index: 2, kind: input, shape index: {}]   ;;  %s4379_s3 = inlined_call_operand.hbm [shape: f32[2,4,4,32], index: 3, kind: input, shape index: {}]   ;;  %s4380_s4 = inlined_call_operand.hbm [shape: f32[2,4,4,32], index: 4, kind: input, shape index: {}]   ;;  %s4381_s5 = inlined_call_operand.hbm [shape: f32[2,4,4,32], index: 5, kind: input, shape index: {}]   ;;  %s4382_s6 = inlined_call_operand.hbm [shape: bf16[32,16], index: 6, kind: input, shape index: {}]   ;;  %s4383_s7 = inlined_call_operand.hbm [shape: f32[1,16], index: 7, kind: input, shape index: {}]   ;;  %s4384_s8 = inlined_call_operand.hbm [shape: bf16[144,16], index: 8, kind: input, shape index: {}]   ;;  %s4385_s9 = inlined_call_operand.hbm [shape: f32[1,16], index: 9, kind: input, shape index: {}]   ;;  %s4386_s10 = inlined_call_operand.hbm [shape: f32[1,16], index: 10, kind: input, shape index: {}]   ;;  %s4387_s11 = inlined_call_operand.hbm [shape: bf16[2,8,8,16], index: 11, kind: output, shape index: {0}]   ;;  %s4388_s12 = inlined_call_operand.hbm [shape: bf16[2,4,4,16], index: 12, kind: output, shape index: {1}]  }
   0x1   :  { %4452 = sst [smem:[#allocation64_spill]] %s4376_s0 }
   0x2   :  { %4453 = sst [smem:[#allocation65_spill]] %s4377_s1 }
   0x3   :  { %4454 = sst [smem:[#allocation66_spill]] %s4378_s2 }
   0x4   :  { %4455 = sst [smem:[#allocation67_spill]] %s4379_s3 }
   0x5   :  { %4456 = sst [smem:[#allocation68_spill]] %s4380_s4 }
   0x6   :  { %4457 = sst [smem:[#allocation69_spill]] %s4381_s5 }
   0x7   :  { %4458 = sst [smem:[#allocation70_spill]] %s4382_s6 }
   0x8   :  { %4459 = sst [smem:[#allocation71_spill]] %s4383_s7 }
   0x9   :  { %4460 = sst [smem:[#allocation72_spill]] %s4384_s8 }
   0xa   :  { %4461 = sst [smem:[#allocation73_spill]] %s4385_s9 }
   0xb   :  { %4462 = sst [smem:[#allocation74_spill]] %s4386_s10 }
   0xc   :  { %4463 = sst [smem:[#allocation75_spill]] %s4387_s11 }
   0xd   :  { %4464 = sst [smem:[#allocation76_spill]] %s4388_s12 }
   0xe   :  { %18 = vsyncpa [#allocation4], 0 }
   0xf   :  { %20 = vsyncpa [#allocation4 + $0x1], 0 }
  0x10   :  { %21 = vsyncpa [#allocation7], 0 }
  0x11   :  { %23 = vsyncpa [#allocation7 + $0x1], 0 }
  0x12   :  { %24 = vsyncpa [#allocation10], 0 }
  0x13   :  { %26 = vsyncpa [#allocation10 + $0x1], 0 }
  0x14   :  { %27 = vsyncpa [#allocation13], 0 }
  0x15   :  { %29 = vsyncpa [#allocation13 + $0x1], 0 }
  0x16   :  { %30 = vsyncpa [#allocation16], 0 }
  0x17   :  { %31 = vsyncpa [#allocation19], 0 }
  0x18   :  { %32 = vsyncpa [#allocation5], 0 }
  0x19   :  { %34 = vsyncpa [#allocation5 + $0x1], 0 }
  0x1a   :  { %35 = vsyncpa [#allocation23], 0 }
  0x1b   :  { %37 = vsyncpa [#allocation23 + $0x1], 0  ;;  %s3114_s21 = smov 0   ;;  %s3116_s22 = smov 0  }
  0x1c   :  { %s3118_s23 = smov 0   ;;  %s3120_s24 = smov 0  }
  0x1d   :  { %s3122_s25 = smov 0   ;;  %s3124_s26 = smov 0  }
  0x1e   :  { %s3126_s27 = smov 0   ;;  %s3128_s28 = smov 0  }
  0x1f   :  { %s3130_s29 = smov 0   ;;  %s3132_s30 = smov 0  }
  0x20   :  { %s3134_s13 = smov 0   ;;  %s3136_s14 = smov 0  }
  0x21   :  { %s3138_s15 = smov 0   ;;  %s3140_s16 = smov 0  }
  0x22   :  { %s3142_s17 = smov 0   ;;  %s3144_s18 = smov 0  }
  0x23   :  { %s3146_s19 = smov 0   ;;  %s3148_s20 = smov 0  }
  0x24   :  { %s3150_s11 = smov 0   ;;  %s3152_s12 = smov 0  }
  0x25   :  { %4465 = sst [smem:[#allocation35_spill]] %s3150_s11 }
  0x26 LB: > { %4467 = sst [smem:[#allocation36_spill]] %s2942_s21  ;;  %s4470_s11 = sld [smem:[#allocation35_spill]]  ;;  %s3018_s12 = sphi %s3152_s12, %s43_s12   ;;  %s3010_s20 = sphi %s3148_s20, %s4622_s20   ;;  %s3006_s19 = sphi %s3146_s19, %s4621_s19   ;;  %s3002_s18 = sphi %s3144_s18, %s4611_s18   ;;  %s2998_s17 = sphi %s3142_s17, %s4610_s17   ;;  %s2994_s16 = sphi %s3140_s16, %s4609_s16   ;;  %s2990_s15 = sphi %s3138_s15, %s4620_s15   ;;  %s2986_s14 = sphi %s3136_s14, %s4607_s14   ;;  %s2982_s13 = sphi %s3134_s13, %s4619_s13   ;;  %s2978_s30 = sphi %s3132_s30, %s4605_s30   ;;  %s2974_s29 = sphi %s3130_s29, %s4618_s29   ;;  %s2970_s28 = sphi %s3128_s28, %s4604_s28   ;;  %s2966_s27 = sphi %s3126_s27, %s4603_s27   ;;  %s2962_s26 = sphi %s3124_s26, %s4617_s26   ;;  %s2958_s25 = sphi %s3122_s25, %s4602_s25   ;;  %s2954_s24 = sphi %s3120_s24, %s4601_s24   ;;  %s2950_s23 = sphi %s3118_s23, %s4614_s23   ;;  %s2946_s22 = sphi %s3116_s22, %s4600_s22   ;;  %s2942_s21 = sphi %s3114_s21, %s4599_s21  }
  0x27   : > { %4468 = sst [smem:[#allocation37_spill]] %s2946_s22  ;;  %s3215_s5 = sadd.s32 4294967295, %s3018_s12  }
  0x28   : > { %4469 = sst [smem:[#allocation38_spill]] %s2950_s23  ;;  %p2027_p0 = scmp.ge.s32.totalorder %s3018_s12, 1 }
  0x29   : > { %4471 = sst [smem:[#allocation35_spill]] %s2954_s24  ;;  %p4406_p1 = scmp.eq.s32.totalorder %s3215_s5, 0 }
  0x2a   : > { %4472 = sst [smem:[#allocation39_spill]] %s2958_s25  ;;  %p501_p2 = scmp.lt.s32.totalorder %s3018_s12, 5 }
  0x2b   : > { %4473 = sst [smem:[#allocation40_spill]] %s2962_s26  ;;  %s3021_s23 = smov [#allocation15]  }
  0x2c   : > { %4474 = sst [smem:[#allocation41_spill]] %s2966_s27  ;;  %p3220_p3 = pnand %p2027_p0, %p501_p2 }
  0x2d   : > { %4475 = sst [smem:[#allocation42_spill]] %s2970_s28  ;;  %s527_s4 = sshll.u32 %s3021_s23, 4  ;;  %s3234_s4 = int_to_ptr.vmem [resolvable:$true] %s527_s4 }
  0x2e   : > { %4476 = sst [smem:[#allocation43_spill]] %s2974_s29  ;;  %p2194_p4 = pneg %p3220_p3 }
  0x2f   : > { %4477 = sst [smem:[#allocation44_spill]] %s2982_s13  ;;  %s3022_s24 = smov [#allocation18]  }
  0x30   : > { %4478 = sst [smem:[#allocation45_spill]] %s2986_s14  ;;  %p3230_p5 = pnand %p2194_p4, %p4406_p1 }
  0x31   : > { %4479 = sst [smem:[#allocation46_spill]] %s2990_s15  ;;  %s3236_s25 = sshll.u32 %s3022_s24, 4  ;;  %s552_s25 = int_to_ptr.vmem [resolvable:$true] %s3236_s25 }
  0x32   : > { %4480 = sst [smem:[#allocation47_spill]] %s2994_s16  ;;  %p3246_p7 = pneg %p3230_p5 }
  0x33   : > { %4481 = sst [smem:[#allocation48_spill]] %s2998_s17  ;;  %s4489_s6 = sld [smem:[#allocation70_spill]] }
  0x34   : > { %4482 = sst [smem:[#allocation49_spill]] %s3002_s18 }
  0x35   : > { %4483 = sst [smem:[#allocation50_spill]] %s3006_s19  ;;  %s3020_s19 = smov [#allocation14]  }
  0x36   : > { %4484 = sst [smem:[#allocation51_spill]] %s3010_s20  ;;  %s513_s21 = sshll.u32 %s3020_s19, 4  ;;  %s3224_s21 = int_to_ptr.vmem [resolvable:$true] %s513_s21 }
  0x37   : > { %4485 = sst [smem:[#allocation52_spill]] %s4470_s11 }
  0x38   : > { %s4486_s18 = scalar_select %p3220_p3, 1, 0 }
  0x39   : > { %s4488_s22 = scalar_select %p3230_p5, 1, 0 }
  0x3a   : > { %4487 = sst [smem:[#allocation53_spill]] %s4486_s18  ;;  %s2440_s19 = scalar_lea.hbm %s4489_s6, 256 }
  0x3b   : > { %p2441_p6 = scmp.ne.s32.totalorder %s4489_s6, %s2440_s19  ;;  %p2447_p10 = scmp.lt.u32.totalorder %s2440_s19, %s4489_s6 }
  0x3d   : > { %p2443_p8 = pnand %p3246_p7, %p2441_p6 }
  0x3f   : > { %p2444_p9 = pneg %p2443_p8 }
  0x41   : > { %p2449_p11 = pnand %p2447_p10, %p2444_p9 }
  0x43   : > { %2452 = shalt.err (!%p2449_p11)
}
  0x44   : > { %s2453_s2 = scalar_lea.vmem %s3224_s21, 256  ;;  %p2461_p2 = scmp.lt.s32.totalorder %s3224_s21, %s3224_s21 }
  0x45   : > { %p2454_p12 = scmp.ne.s32.totalorder %s3224_s21, %s2453_s2  ;;  %p2462_p4 = scmp.lt.s32.totalorder %s2453_s2, %s2453_s2 }
  0x47   : > { %p2456_p13 = pnand %p2454_p12, %p3246_p7  ;;  %p2463_p6 = por %p2462_p4, %p2461_p2 }
  0x49   : > { %p2457_p0 = pneg %p2456_p13 }
  0x4b   : > { %p2464_p8 = pnand %p2463_p6, %p2457_p0 }
  0x4d   : > { %2467 = shalt.err (!%p2464_p8)
}
  0x4e   : > { %s4408_s26 = smov 64   ;;  %s4410_s27 = smov 4  }
  0x4f   : > { %2197 = dma.hbm_to_vmem [thread:$0]  (!%p3230_p5), %s4489_s6, 256, %s3224_s21, [#allocation13], %s4408_s26, %s4408_s26, %s4410_s27  }
  0x50   : > { %s4491_s7 = sld [smem:[#allocation71_spill]] }
  0x56   : > { %s2468_s2 = scalar_lea.hbm %s4491_s7, 16 }
  0x57   : > { %p2469_p9 = scmp.ne.s32.totalorder %s4491_s7, %s2468_s2  ;;  %p2475_p12 = scmp.lt.u32.totalorder %s2468_s2, %s4491_s7 }
  0x59   : > { %p2471_p10 = pnand %p2469_p9, %p3246_p7 }
  0x5b   : > { %p2472_p11 = pneg %p2471_p10 }
  0x5d   : > { %p2477_p13 = pnand %p2475_p12, %p2472_p11 }
  0x5f   : > { %2480 = shalt.err (!%p2477_p13)
}
  0x60   : > { %s2481_s21 = scalar_lea.vmem %s3234_s4, 16  ;;  %s2488_s0 = scalar_lea.vmem %s3234_s4, 32 }
  0x61   : > { %p2482_p0 = scmp.ne.s32.totalorder %s3234_s4, %s2481_s21  ;;  %p2489_p6 = scmp.lt.s32.totalorder %s3234_s4, %s3234_s4 }
  0x62   : > { %p2490_p8 = scmp.lt.s32.totalorder %s2488_s0, %s2481_s21 }
  0x63   : > { %p2484_p2 = pnand %p2482_p0, %p3246_p7 }
  0x64   : > { %p2491_p9 = por %p2490_p8, %p2489_p6 }
  0x65   : > { %p2485_p4 = pneg %p2484_p2 }
  0x67   : > { %p2492_p10 = pnand %p2491_p9, %p2485_p4 }
  0x69   : > { %2495 = shalt.err (!%p2492_p10)
}
  0x6a   : > { %2200 = dma.hbm_to_vmem [thread:$0]  (!%p3230_p5), %s4491_s7, 16, %s3234_s4, [#allocation16]  }
  0x6b   : > { %s4492_s9 = sld [smem:[#allocation73_spill]] }
  0x71   : > { %s2496_s19 = scalar_lea.hbm %s4492_s9, 16 }
  0x72   : > { %p2497_p11 = scmp.ne.s32.totalorder %s4492_s9, %s2496_s19  ;;  %p2503_p0 = scmp.lt.u32.totalorder %s2496_s19, %s4492_s9 }
  0x74   : > { %p2499_p12 = pnand %p2497_p11, %p3246_p7 }
  0x76   : > { %p2500_p13 = pneg %p2499_p12 }
  0x78   : > { %p2505_p2 = pnand %p2503_p0, %p2500_p13 }
  0x7a   : > { %2508 = shalt.err (!%p2505_p2)
}
  0x7b   : > { %s2509_s0 = scalar_lea.vmem %s552_s25, 16  ;;  %s2516_s4 = scalar_lea.vmem %s552_s25, 32 }
  0x7c   : > { %p2510_p4 = scmp.ne.s32.totalorder %s552_s25, %s2509_s0  ;;  %p2517_p9 = scmp.lt.s32.totalorder %s552_s25, %s552_s25 }
  0x7d   : > { %p2518_p10 = scmp.lt.s32.totalorder %s2516_s4, %s2509_s0 }
  0x7e   : > { %p2512_p6 = pnand %p2510_p4, %p3246_p7 }
  0x7f   : > { %p2519_p1 = por %p2518_p10, %p2517_p9 }
  0x80   : > { %p2513_p8 = pneg %p2512_p6 }
  0x82   : > { %p2520_p3 = pnand %p2519_p1, %p2513_p8 }
  0x84   : > { %2523 = shalt.err (!%p2520_p3)
}
  0x85   : > { %2206 = dma.hbm_to_vmem [thread:$0]  (!%p3230_p5), %s4492_s9, 16, %s552_s25, [#allocation19]  }
  0x86   : > { %s52_s29 = sadd.s32 1, %s3010_s20  ;;  %s55_s18 = sadd.s32 1, %s4470_s11 }
  0x87   : > { %p53_p11 = scmp.ge.s32.totalorder %s52_s29, 2  ;;  %p4421_p12 = scmp.eq.s32.totalorder %s3018_s12, 0 }
  0x88   : > { %s3317_s19 = sshll.u32 %s3010_s20, 2  ;;  %s120_s27 = sadd.s32 1, %s2986_s14 }
  0x89   : > { %s4625_s29 = smov (%p53_p11, %s52_s29), 0  ;;  %s4627_s18 = smov (!%p53_p11, %s55_s18), %s4470_s11 }
  0x8a   : > { %4493 = sst [smem:[#allocation54_spill]] %s4625_s29  ;;  %s60_s23 = ssub.s32 %s3010_s20, %s4625_s29 }
  0x8b   : > { %s88_s24 = sadd.s32 7, %s3317_s19  ;;  %p57_p1 = scmp.ge.s32.totalorder %s4627_s18, 2 }
  0x8c   : > { %s90_s25 = ssub.s32 0, %s88_s24  ;;  %s1999_s2 = sshll.u32 %s4625_s29, 2 }
  0x8d   : > { %s4629_s18 = smov (%p57_p1, %s4627_s18), 0  ;;  %s1996_s21 = smin.u32 %s90_s25, %s88_s24 }
  0x8e   : > { %4494 = sst [smem:[#allocation55_spill]] %s4629_s18  ;;  %s102_s0 = sadd.s32 7, %s1999_s2 }
  0x8f   : > { %s3330_s4 = ssub.s32 %s4470_s11, %s4629_s18  ;;  %s92_s8 = sand.u32 7, %s1996_s21  }
  0x90   : > { %s3333_s10 = sor.u32 %s60_s23, %s3330_s4  ;;  %s104_s26 = ssub.s32 0, %s102_s0 }
  0x91   : > { %p1998_p13 = scmp.lt.s32.totalorder %s92_s8, 0  ;;  %s99_s6 = sadd.s32 8, %s92_s8 }
  0x92   : > { %s2000_s7 = smin.u32 %s104_s26, %s102_s0  ;;  %p127_p0 = scmp.ne.s32.totalorder %s2986_s14, %s2982_s13 }
  0x93   : > { %s4631_s6 = smov (!%p1998_p13, %s99_s6), %s92_s8  ;;  %s106_s24 = sand.u32 7, %s2000_s7  }
  0x94   : > { %p3341_p2 = por %p127_p0, %p4421_p12  ;;  %p133_p4 = scmp.ne.s32.totalorder %s2982_s13, %s2978_s30 }
  0x95   : > { %p4496_p6 = scmp.eq.s32.totalorder %s3215_s5, 0  ;;  %s4416_s26 = sadd.s32 4, %s3317_s19 }
  0x96   : > { %p2002_p9 = scmp.lt.s32.totalorder %s106_s24, 0  ;;  %s113_s21 = sadd.s32 8, %s106_s24 }
  0x97   : > { %p3349_p8 = por %p133_p4, %p4496_p6  ;;  %s3356_s0 = ssub.s32 0, %s4416_s26 }
  0x98   : > { %4499 = sst [smem:[#allocation57_spill]] %s3356_s0  ;;  %s4633_s21 = smov (!%p2002_p9, %s113_s21), %s106_s24 }
  0x99   : > { %s4497_s25 = scalar_select %p3349_p8, 1, 0 }
  0x9a   : > { %s3358_s7 = sadd.s32 4, %s1999_s2  ;;  %p4420_p10 = scmp.lt.s32.totalorder %s3018_s12, 4 }
  0x9b   : > { %4498 = sst [smem:[#allocation56_spill]] %s4497_s25  ;;  %s116_s8 = ssub.s32 %s4631_s6, %s4633_s21 }
  0x9c   : > { %4500 = sst [smem:[#allocation58_spill]] %s3358_s7  ;;  %s3362_s30 = sshll.u32 %s4470_s11, 3 }
  0x9d   : > { %s117_s9 = sor.u32 %s116_s8, %s3330_s4  ;;  %s3368_s25 = sand.u32 1, %s3018_s12  }
  0x9e   : > { %p118_p11 = scmp.eq.s32.totalorder %s117_s9, 0  ;;  %s598_s13 = sand.u32 1, %s2986_s14  }
  0x9f   : > { %s2038_s24 = sshll.u32 %s598_s13, 3  ;;  %s619_s2 = sadd.s32 %s3362_s30, %s4631_s6 }
  0xa0   : > { %s3372_s26 = scalar_select %p118_p11, %s2986_s14, %s120_s27  }
  0xa1   : > { %s2044_s29 = sshll.u32 %s619_s2, 7  ;;  %s4502_s1 = sld [smem:[#allocation65_spill]] }
  0xa2   : > { %4501 = sst [smem:[#allocation59_spill]] %s3372_s26  ;;  %s600_s8 = scalar_lea.vmem [#allocation6], %s2038_s24 }
  0xa3   : > { %s623_s9 = sshll.u32 %s600_s8, 4  ;;  %p3386_p1 = pnand %p4420_p10, %p3341_p2  ;;  %s3380_s9 = int_to_ptr.vmem [resolvable:$true] %s623_s9 }
  0xa4   : > { %s4427_s6 = scalar_lea.sflag [#allocation7], %s3368_s25 }
  0xa5   : > { %p2526_p0 = pneg %p3386_p1 }
  0xa7   : > { %s3378_s21 = scalar_lea.hbm %s4502_s1, %s2044_s29  ;;  %s2529_s23 = scalar_lea.hbm %s4502_s1, 2048 }
  0xa8   : > { %s2524_s13 = scalar_lea.hbm %s3378_s21, 128  ;;  %p2530_p2 = scmp.lt.u32.totalorder %s3378_s21, %s4502_s1 }
  0xa9   : > { %p2525_p13 = scmp.ne.s32.totalorder %s3378_s21, %s2524_s13  ;;  %p2531_p9 = scmp.lt.u32.totalorder %s2529_s23, %s2524_s13 }
  0xaa   : > { %p2533_p10 = scmp.lt.u32.totalorder %s2524_s13, %s3378_s21 }
  0xab   : > { %p2527_p4 = pnand %p2526_p0, %p2525_p13  ;;  %p2532_p11 = por %p2531_p9, %p2530_p2 }
  0xad   : > { %p2528_p6 = pneg %p2527_p4  ;;  %p2534_p12 = por %p2533_p10, %p2532_p11 }
  0xaf   : > { %p2535_p3 = pnand %p2534_p12, %p2528_p6 }
  0xb1   : > { %2538 = shalt.err (!%p2535_p3)
}
  0xb2   : > { %s2539_s2 = scalar_lea.vmem %s3380_s9, 128  ;;  %s3025_s8 = smov [#allocation6]  }
  0xb3   : > { %p2540_p13 = scmp.ne.s32.totalorder %s3380_s9, %s2539_s2  ;;  %s2544_s29 = sshll.u32 %s3025_s8, 4  ;;  %s2545_s29 = int_to_ptr.vmem [resolvable:$false] %s2544_s29 }
  0xb4   : > { %s2546_s0 = scalar_lea.vmem %s2545_s29, 256  ;;  %p2547_p5 = scmp.lt.s32.totalorder %s3380_s9, %s2545_s29 }
  0xb5   : > { %p2542_p4 = pnand %p2540_p13, %p2526_p0  ;;  %p2548_p2 = scmp.lt.s32.totalorder %s2546_s0, %s2539_s2 }
  0xb7   : > { %p2543_p8 = pneg %p2542_p4  ;;  %p2549_p9 = por %p2548_p2, %p2547_p5 }
  0xb9   : > { %p2550_p10 = pnand %p2549_p9, %p2543_p8 }
  0xbb   : > { %2553 = shalt.err (!%p2550_p10)
}
  0xbc   : > { %2216 = dma.hbm_to_vmem [thread:$0]  (!%p3386_p1), %s3378_s21, 128, %s3380_s9, %s4427_s6  }
  0xbd   : > { %s1994_s27 = sadd.s32 4294967294, %s3018_s12   ;;  %s64_s13 = sadd.s32 1, %s2998_s17 }
  0xbe   : > { %p4504_p5 = scmp.eq.s32.totalorder %s3333_s10, 0  ;;  %p71_p12 = scmp.ne.s32.totalorder %s2998_s17, %s2994_s16 }
  0xbf   : > { %p77_p3 = scmp.ne.s32.totalorder %s2994_s16, %s2990_s15  ;;  %s3430_s7 = sshll.u32 %s3010_s20, 1 }
  0xc0   : > { %s3423_s23 = scalar_select %p4504_p5, %s2998_s17, %s64_s13  }
  0xc1   : > { %p460_p8 = scmp.eq.s32.totalorder %s3215_s5, 3  ;;  %p4506_p1 = scmp.eq.s32.totalorder %s3018_s12, 0 }
  0xc2   : > { %4505 = sst [smem:[#allocation60_spill]] %s3423_s23  ;;  %p4507_p6 = scmp.eq.s32.totalorder %s3215_s5, 0 }
  0xc3   : > { %p73_p0 = por %p4506_p1, %p71_p12  ;;  %s4426_s21 = sadd.s32 3, %s3430_s7 }
  0xc4   : > { %p3440_p11 = por %p4507_p6, %p77_p3  ;;  %s4425_s9 = sadd.s32 2, %s3430_s7 }
  0xc5   : > { %s3448_s24 = ssub.s32 0, %s4426_s21  ;;  %s3452_s2 = ssub.s32 0, %s4425_s9 }
  0xc6   : > { %s4508_s10 = scalar_select %p3440_p11, 1, 0 }
  0xc7   : > { %p3454_p13 = por %p460_p8, %p71_p12  ;;  %p466_p4 = scmp.eq.s32.totalorder %s1994_s27, 3 }
  0xc8   : > { %4509 = sst [smem:[#allocation61_spill]] %s4508_s10  ;;  %s3459_s29 = sand.u32 1, %s2998_s17  }
  0xc9   : > { %s4510_s8 = scalar_select %p3454_p13, 1, 0 }
  0xca   : > { %p4512_p2 = scmp.lt.s32.totalorder %s3018_s12, 4  ;;  %p3470_p10 = por %p466_p4, %p77_p3 }
  0xcb   : > { %4511 = sst [smem:[#allocation62_spill]] %s4510_s8  ;;  %s2052_s9 = sshll.u32 %s3459_s29, 3 }
  0xcc   : > { %p3463_p9 = pnand %p4512_p2, %p73_p0  ;;  %s3476_s21 = sshll.u32 %s4470_s11, 2 }
  0xcd   : > { %s4514_s13 = scalar_select %p3470_p10, 1, 0 }
  0xce   : > { %s4513_s0 = scalar_select %p3463_p9, 1, 0 }
  0xcf   : > { %4515 = sst [smem:[#allocation63_spill]] %s4514_s13  ;;  %s668_s27 = scalar_lea.vmem [#allocation9], %s2052_s9 }
  0xd0   : > { %s677_s6 = sshll.u32 %s668_s27, 4  ;;  %s674_s18 = sadd.s32 %s3476_s21, %s3430_s7  ;;  %s3480_s6 = int_to_ptr.vmem [resolvable:$true] %s677_s6 }
  0xd1   : > { %s2055_s1 = sshll.u32 %s674_s18, 6  ;;  %s4516_s3 = sld [smem:[#allocation67_spill]] }
  0xd2   : > { %s3026_s26 = smov [#allocation17]   ;;  %s4441_s11 = scalar_lea.sflag [#allocation10], %s3368_s25 }
  0xd3   : > { %s3487_s14 = sshll.u32 %s3026_s26, 4  ;;  %p4440_p12 = pneg %p3463_p9  ;;  %s538_s14 = int_to_ptr.vmem [resolvable:$true] %s3487_s14 }
  0xd7   : > { %s3485_s17 = scalar_lea.hbm %s4516_s3, %s2055_s1  ;;  %s2559_s1 = scalar_lea.hbm %s4516_s3, 512 }
  0xd8   : > { %s2554_s13 = scalar_lea.hbm %s3485_s17, 128  ;;  %p2560_p1 = scmp.lt.u32.totalorder %s3485_s17, %s4516_s3 }
  0xd9   : > { %p2555_p5 = scmp.ne.s32.totalorder %s3485_s17, %s2554_s13  ;;  %p2561_p0 = scmp.lt.u32.totalorder %s2559_s1, %s2554_s13 }
  0xda   : > { %p2563_p4 = scmp.lt.u32.totalorder %s2554_s13, %s3485_s17 }
  0xdb   : > { %p2557_p3 = pnand %p4440_p12, %p2555_p5  ;;  %p2562_p6 = por %p2561_p0, %p2560_p1 }
  0xdd   : > { %p2558_p8 = pneg %p2557_p3  ;;  %p2564_p2 = por %p2563_p4, %p2562_p6 }
  0xdf   : > { %p2565_p10 = pnand %p2564_p2, %p2558_p8 }
  0xe1   : > { %2568 = shalt.err (!%p2565_p10)
}
  0xe2   : > { %s2569_s26 = scalar_lea.vmem %s3480_s6, 128  ;;  %s3027_s27 = smov [#allocation9]  }
  0xe3   : > { %p2570_p5 = scmp.ne.s32.totalorder %s3480_s6, %s2569_s26  ;;  %s2574_s18 = sshll.u32 %s3027_s27, 4  ;;  %s2575_s18 = int_to_ptr.vmem [resolvable:$false] %s2574_s18 }
  0xe4   : > { %s2576_s20 = scalar_lea.vmem %s2575_s18, 256  ;;  %p2577_p11 = scmp.lt.s32.totalorder %s3480_s6, %s2575_s18 }
  0xe5   : > { %p2572_p3 = pnand %p2570_p5, %p4440_p12  ;;  %p2578_p1 = scmp.lt.s32.totalorder %s2576_s20, %s2569_s26 }
  0xe7   : > { %p2573_p13 = pneg %p2572_p3  ;;  %p2579_p0 = por %p2578_p1, %p2577_p11 }
  0xe9   : > { %p2580_p6 = pnand %p2579_p0, %p2573_p13 }
  0xeb   : > { %2583 = shalt.err (!%p2580_p6)
}
  0xec   : > { %s4517_s13 = smov 4   ;;  %s4518_s1 = smov 64  }
  0xed   : > { %2222 = dma.hbm_to_vmem [thread:$0]  (!%p3463_p9), %s3485_s17, 128, %s3480_s6, %s4441_s11, %s4518_s1, %s4518_s1, %s4517_s13  }
  0xee   : > { %s4519_s27 = sld [smem:[#allocation72_spill]] }
  0xf4   : > { %s4520_s3 = smov %s4519_s27  ;;  %s2584_s26 = scalar_lea.hbm %s4519_s27, 1152 }
  0xf5   : > { %p2585_p11 = scmp.ne.s32.totalorder %s4520_s3, %s2584_s26  ;;  %p2591_p8 = scmp.lt.u32.totalorder %s2584_s26, %s4520_s3 }
  0xf7   : > { %p2587_p13 = pnand %p2585_p11, %p3246_p7 }
  0xf9   : > { %p2588_p10 = pneg %p2587_p13 }
  0xfb   : > { %p2593_p4 = pnand %p2591_p8, %p2588_p10 }
  0xfd   : > { %2596 = shalt.err (!%p2593_p4)
}
  0xfe   : > { %s2597_s10 = scalar_lea.vmem %s538_s14, 1152  ;;  %p2605_p1 = scmp.lt.s32.totalorder %s538_s14, %s538_s14 }
  0xff   : > { %p2598_p2 = scmp.ne.s32.totalorder %s538_s14, %s2597_s10  ;;  %p2606_p0 = scmp.lt.s32.totalorder %s2597_s10, %s2597_s10 }
 0x101   : > { %p2600_p5 = pnand %p2598_p2, %p3246_p7  ;;  %p2607_p6 = por %p2606_p0, %p2605_p1 }
 0x103   : > { %p2601_p3 = pneg %p2600_p5 }
 0x105   : > { %p2608_p12 = pnand %p2607_p6, %p2601_p3 }
 0x107   : > { %2611 = shalt.err (!%p2608_p12)
}
 0x108   : > { %p4521_p11 = scmp.ne.s32.totalorder %s4488_s22, 0  ;;  %s3028_s6 = smov [#allocation20]  }
 0x109   : > { %s562_s8 = sshll.u32 %s3028_s6, 4  ;;  %s2034_s23 = sshll.u32 %s3459_s29, 5  ;;  %s563_s8 = int_to_ptr.vmem [resolvable:$true] %s562_s8 }
 0x10a   : > { %2203 = dma.hbm_to_vmem [thread:$0]  (!%p4521_p11), %s4520_s3, 1152, %s538_s14, [#allocation16], %s4518_s1, %s4518_s1, %s4517_s13  }
 0x10b   : > { %s4522_s27 = sld [smem:[#allocation74_spill]] }
 0x111   : > { %s4523_s11 = smov %s4522_s27  ;;  %s2612_s26 = scalar_lea.hbm %s4522_s27, 16 }
 0x112   : > { %p2613_p12 = scmp.ne.s32.totalorder %s4523_s11, %s2612_s26  ;;  %p2619_p8 = scmp.lt.u32.totalorder %s2612_s26, %s4523_s11 }
 0x114   : > { %p2615_p13 = pnand %p2613_p12, %p3246_p7 }
 0x116   : > { %p2616_p10 = pneg %p2615_p13 }
 0x118   : > { %p2621_p4 = pnand %p2619_p8, %p2616_p10 }
 0x11a   : > { %2624 = shalt.err (!%p2621_p4)
}
 0x11b   : > { %s2625_s14 = scalar_lea.vmem %s563_s8, 16  ;;  %s2632_s13 = scalar_lea.vmem %s563_s8, 32 }
 0x11c   : > { %p2626_p2 = scmp.ne.s32.totalorder %s563_s8, %s2625_s14  ;;  %p2633_p1 = scmp.lt.s32.totalorder %s563_s8, %s563_s8 }
 0x11d   : > { %p2634_p0 = scmp.lt.s32.totalorder %s2632_s13, %s2625_s14 }
 0x11e   : > { %p2628_p5 = pnand %p2626_p2, %p3246_p7 }
 0x11f   : > { %p2635_p6 = por %p2634_p0, %p2633_p1 }
 0x120   : > { %p2629_p3 = pneg %p2628_p5 }
 0x122   : > { %p2636_p9 = pnand %p2635_p6, %p2629_p3 }
 0x124   : > { %2639 = shalt.err (!%p2636_p9)
}
 0x125   : > { %2209 = dma.hbm_to_vmem [thread:$0]  (!%p4521_p11), %s4523_s11, 16, %s563_s8, [#allocation19]  }
 0x126   : > { %s4524_s16 = sadd.s32 %s3362_s30, %s3317_s19  ;;  %s4525_s10 = sld [smem:[#allocation64_spill]] }
 0x127   : > { %s2037_s28 = sshll.u32 %s4524_s16, 7  ;;  %s577_s22 = scalar_lea.vmem [#allocation3], %s2034_s23 }
 0x128   : > { %s586_s26 = sshll.u32 %s577_s22, 4  ;;  %s574_s18 = scalar_lea.sflag [#allocation4], %s3459_s29  ;;  %s3569_s26 = int_to_ptr.vmem [resolvable:$true] %s586_s26 }
 0x129   : > { %p4526_p9 = scmp.ne.s32.totalorder %s4513_s0, 0 }
 0x12b   : > { %p4527_p11 = pneg %p4526_p9 }
 0x12c   : > { %s3567_s27 = scalar_lea.hbm %s4525_s10, %s2037_s28  ;;  %s2645_s14 = scalar_lea.hbm %s4525_s10, 2048 }
 0x12d   : > { %s2640_s20 = scalar_lea.hbm %s3567_s27, 512  ;;  %p2646_p10 = scmp.lt.u32.totalorder %s3567_s27, %s4525_s10 }
 0x12e   : > { %p2641_p7 = scmp.ne.s32.totalorder %s3567_s27, %s2640_s20  ;;  %p2647_p8 = scmp.lt.u32.totalorder %s2645_s14, %s2640_s20 }
 0x12f   : > { %p2649_p2 = scmp.lt.u32.totalorder %s2640_s20, %s3567_s27 }
 0x130   : > { %p2643_p12 = pnand %p2641_p7, %p4527_p11  ;;  %p2648_p4 = por %p2647_p8, %p2646_p10 }
 0x132   : > { %p2644_p13 = pneg %p2643_p12  ;;  %p2650_p5 = por %p2649_p2, %p2648_p4 }
 0x134   : > { %p2651_p3 = pnand %p2650_p5, %p2644_p13 }
 0x136   : > { %2654 = shalt.err (!%p2651_p3)
}
 0x137   : > { %s2655_s23 = scalar_lea.vmem %s3569_s26, 512  ;;  %p4528_p0 = pmov %p4527_p11 }
 0x138   : > { %p2656_p1 = scmp.ne.s32.totalorder %s3569_s26, %s2655_s23  ;;  %s3029_s17 = smov [#allocation3]  }
 0x139   : > { %s2660_s16 = sshll.u32 %s3029_s17, 4  ;;  %s2661_s16 = int_to_ptr.vmem [resolvable:$false] %s2660_s16 }
 0x13a   : > { %p2658_p6 = pnand %p2656_p1, %p4528_p0  ;;  %s2662_s28 = scalar_lea.vmem %s2661_s16, 1024 }
 0x13b   : > { %p2663_p11 = scmp.lt.s32.totalorder %s3569_s26, %s2661_s16  ;;  %p2664_p12 = scmp.lt.s32.totalorder %s2662_s28, %s2655_s23 }
 0x13c   : > { %p2659_p7 = pneg %p2658_p6 }
 0x13d   : > { %p2665_p10 = por %p2664_p12, %p2663_p11 }
 0x13f   : > { %p2666_p8 = pnand %p2665_p10, %p2659_p7 }
 0x141   : > { %2669 = shalt.err (!%p2666_p8)
}
 0x142   : > { %s3030_s6 = smov 128   ;;  %s4529_s9 = sld [smem:[#allocation57_spill]] }
 0x143   : > { %s4530_s22 = sld [smem:[#allocation58_spill]]  ;;  %s4531_s20 = sld [smem:[#allocation43_spill]] }
 0x144   : > { %s4532_s8 = sld [smem:[#allocation42_spill]]  ;;  %s4533_s15 = sld [smem:[#allocation41_spill]] }
 0x145   : > { %s3031_s14 = smov 8   ;;  %s4534_s13 = sadd.s32 4, %s3317_s19 }
 0x146   : > { %2213 = dma.hbm_to_vmem [thread:$0]  (!%p4526_p9), %s3567_s27, 512, %s3569_s26, %s574_s18, %s3030_s6, %s3030_s6, %s3031_s14  }
 0x147   : > { %p4535_p2 = scmp.eq.s32.totalorder %s3018_s12, 0  ;;  %p4537_p1 = scmp.eq.s32.totalorder %s3215_s5, 0 }
 0x148   : > { %s2004_s1 = smin.u32 %s4534_s13, %s4529_s9  ;;  %p4540_p7 = scmp.lt.s32.totalorder %s3018_s12, 4 }
 0x149   : > { %s148_s23 = sand.u32 7, %s2004_s1   ;;  %s160_s17 = ssub.s32 0, %s4530_s22 }
 0x14a   : > { %s2008_s16 = smin.u32 %s4530_s22, %s160_s17  ;;  %s176_s28 = sadd.s32 1, %s4531_s20 }
 0x14b   : > { %p2006_p13 = scmp.lt.s32.totalorder %s148_s23, 0  ;;  %s155_s3 = sadd.s32 8, %s148_s23 }
 0x14c   : > { %s162_s10 = sand.u32 7, %s2008_s16   ;;  %p183_p4 = scmp.ne.s32.totalorder %s4531_s20, %s4532_s8 }
 0x14d   : > { %s4635_s3 = smov (!%p2006_p13, %s155_s3), %s148_s23  ;;  %p189_p9 = scmp.ne.s32.totalorder %s4532_s8, %s4533_s15 }
 0x14e   : > { %p3607_p5 = por %p183_p4, %p4535_p2  ;;  %s632_s19 = sand.u32 1, %s4531_s20  }
 0x14f   : > { %p2010_p3 = scmp.lt.s32.totalorder %s162_s10, 0  ;;  %s169_s29 = sadd.s32 8, %s162_s10 }
 0x150   : > { %p3616_p0 = por %p189_p9, %p4537_p1  ;;  %s2045_s27 = sshll.u32 %s632_s19, 3 }
 0x151   : > { %s4637_s29 = smov (!%p2010_p3, %s169_s29), %s162_s10  ;;  %s653_s26 = sadd.s32 %s3362_s30, %s4635_s3 }
 0x152   : > { %s172_s18 = ssub.s32 %s4635_s3, %s4637_s29  ;;  %s2051_s6 = sshll.u32 %s653_s26, 7 }
 0x153   : > { %s173_s9 = sor.u32 %s172_s18, %s3330_s4  ;;  %s4539_s8 = sld [smem:[#allocation66_spill]] }
 0x154   : > { %p174_p6 = scmp.eq.s32.totalorder %s173_s9, 0  ;;  %s634_s13 = scalar_lea.vmem [#allocation8], %s2045_s27 }
 0x155   : > { %s657_s1 = sshll.u32 %s634_s13, 4  ;;  %p3633_p11 = pnand %p4540_p7, %p3607_p5  ;;  %s3627_s1 = int_to_ptr.vmem [resolvable:$true] %s657_s1 }
 0x156   : > { %s4639_s20 = smov (!%p174_p6, %s4531_s20), %s176_s28 }
 0x157   : > { %p2672_p10 = pneg %p3633_p11 }
 0x159   : > { %s3625_s15 = scalar_lea.hbm %s4539_s8, %s2051_s6  ;;  %s2675_s11 = scalar_lea.hbm %s4539_s8, 2048 }
 0x15a   : > { %s2670_s30 = scalar_lea.hbm %s3625_s15, 128  ;;  %p2676_p4 = scmp.lt.u32.totalorder %s3625_s15, %s4539_s8 }
 0x15b   : > { %p2671_p12 = scmp.ne.s32.totalorder %s3625_s15, %s2670_s30  ;;  %p2677_p2 = scmp.lt.u32.totalorder %s2675_s11, %s2670_s30 }
 0x15c   : > { %p2679_p9 = scmp.lt.u32.totalorder %s2670_s30, %s3625_s15 }
 0x15d   : > { %p2673_p8 = pnand %p2672_p10, %p2671_p12  ;;  %p2678_p5 = por %p2677_p2, %p2676_p4 }
 0x15f   : > { %p2674_p13 = pneg %p2673_p8  ;;  %p2680_p3 = por %p2679_p9, %p2678_p5 }
 0x161   : > { %p2681_p1 = pnand %p2680_p3, %p2674_p13 }
 0x163   : > { %2684 = shalt.err (!%p2681_p1)
}
 0x164   : > { %s2685_s28 = scalar_lea.vmem %s3627_s1, 128  ;;  %s3032_s19 = smov [#allocation8]  }
 0x165   : > { %p2686_p6 = scmp.ne.s32.totalorder %s3627_s1, %s2685_s28  ;;  %s2690_s29 = sshll.u32 %s3032_s19, 4  ;;  %s2691_s29 = int_to_ptr.vmem [resolvable:$false] %s2690_s29 }
 0x166   : > { %s2692_s27 = scalar_lea.vmem %s2691_s29, 256  ;;  %p2693_p8 = scmp.lt.s32.totalorder %s3627_s1, %s2691_s29 }
 0x167   : > { %p2688_p7 = pnand %p2686_p6, %p2672_p10  ;;  %p2694_p4 = scmp.lt.s32.totalorder %s2692_s27, %s2685_s28 }
 0x169   : > { %p2689_p12 = pneg %p2688_p7  ;;  %p2695_p2 = por %p2694_p4, %p2693_p8 }
 0x16b   : > { %p2696_p5 = pnand %p2695_p2, %p2689_p12 }
 0x16d   : > { %2699 = shalt.err (!%p2696_p5)
}
 0x16e   : > { %s4542_s26 = scalar_lea.sflag [#allocation7], %s3368_s25  ;;  %s4543_s18 = sld [smem:[#allocation54_spill]] }
 0x16f   : > { %s4544_s6 = sld [smem:[#allocation40_spill]]  ;;  %s4545_s9 = sld [smem:[#allocation39_spill]] }
 0x170   : > { %s4546_s22 = sld [smem:[#allocation35_spill]]  ;;  %s4547_s14 = sadd.s32 3, %s3430_s7 }
 0x171   : > { %2219 = dma.hbm_to_vmem [thread:$0]  (!%p3633_p11), %s3625_s15, 128, %s3627_s1, %s4542_s26  }
 0x172   : > { %s2012_s13 = smin.u32 %s3448_s24, %s4547_s14  ;;  %p4548_p3 = scmp.eq.s32.totalorder %s3018_s12, 0 }
 0x173   : > { %s232_s30 = sand.u32 3, %s2012_s13   ;;  %p4550_p1 = scmp.eq.s32.totalorder %s3215_s5, 0 }
 0x174   : > { %s4448_s3 = sshll.u32 %s4543_s18, 1  ;;  %p2014_p10 = scmp.lt.s32.totalorder %s232_s30, 0 }
 0x175   : > { %s242_s10 = sadd.s32 3, %s4448_s3  ;;  %s239_s11 = sadd.s32 4, %s232_s30 }
 0x176   : > { %s244_s23 = ssub.s32 0, %s242_s10  ;;  %s260_s16 = sadd.s32 1, %s4544_s6 }
 0x177   : > { %s2016_s17 = smin.u32 %s244_s23, %s242_s10  ;;  %s4641_s11 = smov (!%p2014_p10, %s239_s11), %s232_s30 }
 0x178   : > { %s246_s28 = sand.u32 3, %s2016_s17   ;;  %p267_p13 = scmp.ne.s32.totalorder %s4544_s6, %s4545_s9 }
 0x179   : > { %p273_p9 = scmp.ne.s32.totalorder %s4545_s9, %s4546_s22  ;;  %p2018_p7 = scmp.lt.s32.totalorder %s246_s28, 0 }
 0x17a   : > { %p3680_p11 = por %p267_p13, %p4548_p3  ;;  %s253_s1 = sadd.s32 4, %s246_s28 }
 0x17b   : > { %p3686_p6 = por %p273_p9, %p4550_p1  ;;  %s689_s19 = sand.u32 1, %s4544_s6  }
 0x17c   : > { %s710_s29 = sadd.s32 %s3476_s21, %s4641_s11  ;;  %s4643_s1 = smov (!%p2018_p7, %s253_s1), %s246_s28 }
 0x17d   : > { %s4551_s24 = scalar_select %p3686_p6, 1, 0 }
 0x17e   : > { %s2056_s27 = sshll.u32 %s689_s19, 2  ;;  %s2062_s26 = sshll.u32 %s710_s29, 6 }
 0x17f   : > { %s256_s9 = ssub.s32 %s4641_s11, %s4643_s1  ;;  %s4552_s30 = sld [smem:[#allocation68_spill]] }
 0x180   : > { %s257_s22 = sor.u32 %s256_s9, %s3330_s4  ;;  %s691_s17 = scalar_lea.vmem [#allocation11], %s2056_s27 }
 0x181   : > { %p258_p12 = scmp.eq.s32.totalorder %s257_s22, 0  ;;  %s714_s3 = sshll.u32 %s691_s17, 4  ;;  %s3698_s3 = int_to_ptr.vmem [resolvable:$true] %s714_s3 }
 0x182   : > { %p4554_p8 = scmp.lt.s32.totalorder %s3018_s12, 4 }
 0x183   : > { %s4645_s6 = smov (!%p258_p12, %s4544_s6), %s260_s16 }
 0x184   : > { %p3704_p4 = pnand %p4554_p8, %p3680_p11 }
 0x185   : > { %s4553_s10 = smov %s4552_s30  ;;  %s3696_s23 = scalar_lea.hbm %s4552_s30, %s2062_s26 }
 0x186   : > { %s2700_s11 = scalar_lea.hbm %s3696_s23, 64  ;;  %p2702_p5 = pneg %p3704_p4 }
 0x187   : > { %p2701_p2 = scmp.ne.s32.totalorder %s3696_s23, %s2700_s11  ;;  %s2705_s15 = scalar_lea.hbm %s4553_s10, 512 }
 0x188   : > { %p2706_p9 = scmp.lt.u32.totalorder %s3696_s23, %s4553_s10  ;;  %p2707_p3 = scmp.lt.u32.totalorder %s2705_s15, %s2700_s11 }
 0x189   : > { %p2703_p10 = pnand %p2702_p5, %p2701_p2  ;;  %p2709_p1 = scmp.lt.u32.totalorder %s2700_s11, %s3696_s23 }
 0x18a   : > { %p2708_p11 = por %p2707_p3, %p2706_p9 }
 0x18b   : > { %p2704_p13 = pneg %p2703_p10 }
 0x18c   : > { %p2710_p7 = por %p2709_p1, %p2708_p11 }
 0x18e   : > { %p2711_p12 = pnand %p2710_p7, %p2704_p13 }
 0x190   : > { %2714 = shalt.err (!%p2711_p12)
}
 0x191   : > { %s2715_s16 = scalar_lea.vmem %s3698_s3, 64  ;;  %s3033_s26 = smov [#allocation11]  }
 0x192   : > { %p2716_p8 = scmp.ne.s32.totalorder %s3698_s3, %s2715_s16  ;;  %s2720_s9 = sshll.u32 %s3033_s26, 4  ;;  %s2721_s9 = int_to_ptr.vmem [resolvable:$false] %s2720_s9 }
 0x193   : > { %s2722_s22 = scalar_lea.vmem %s2721_s9, 128  ;;  %p2723_p6 = scmp.lt.s32.totalorder %s3698_s3, %s2721_s9 }
 0x194   : > { %p2718_p2 = pnand %p2716_p8, %p2702_p5  ;;  %p2724_p9 = scmp.lt.s32.totalorder %s2722_s22, %s2715_s16 }
 0x196   : > { %p2719_p10 = pneg %p2718_p2  ;;  %p2725_p3 = por %p2724_p9, %p2723_p6 }
 0x198   : > { %p2726_p11 = pnand %p2725_p3, %p2719_p10 }
 0x19a   : > { %2729 = shalt.err (!%p2726_p11)
}
 0x19b   : > { %s4556_s14 = scalar_lea.sflag [#allocation10], %s3368_s25  ;;  %s4557_s13 = sld [smem:[#allocation38_spill]] }
 0x19c   : > { %s4558_s30 = sld [smem:[#allocation37_spill]]  ;;  %s4560_s11 = sadd.s32 2, %s3430_s7 }
 0x19d   : > { %s4559_s17 = sld [smem:[#allocation36_spill]]  ;;  %s2020_s1 = smin.u32 %s4560_s11, %s3452_s2 }
 0x19e   : > { %2225 = dma.hbm_to_vmem [thread:$0]  (!%p3704_p4), %s3696_s23, 64, %s3698_s3, %s4556_s14  }
 0x19f   : > { %s288_s19 = sand.u32 3, %s2020_s1   ;;  %s4561_s28 = sshll.u32 %s4543_s18, 1 }
 0x1a0   : > { %s2122_s15 = sadd.s32 2, %s4561_s28  ;;  %p2022_p6 = scmp.lt.s32.totalorder %s288_s19, 0 }
 0x1a1   : > { %s300_s29 = ssub.s32 0, %s2122_s15  ;;  %s316_s27 = sadd.s32 1, %s4557_s13 }
 0x1a2   : > { %s295_s16 = sadd.s32 4, %s288_s19  ;;  %s2024_s26 = smin.u32 %s2122_s15, %s300_s29 }
 0x1a3   : > { %p323_p5 = scmp.ne.s32.totalorder %s4557_s13, %s4558_s30  ;;  %s4647_s16 = smov (!%p2022_p6, %s295_s16), %s288_s19 }
 0x1a4   : > { %s302_s9 = sand.u32 3, %s2024_s26   ;;  %p4562_p13 = scmp.eq.s32.totalorder %s3018_s12, 0 }
 0x1a5   : > { %p329_p4 = scmp.ne.s32.totalorder %s4558_s30, %s4559_s17  ;;  %p4564_p7 = scmp.eq.s32.totalorder %s3215_s5, 0 }
 0x1a6   : > { %p3748_p1 = por %p323_p5, %p4562_p13  ;;  %p2026_p8 = scmp.lt.s32.totalorder %s302_s9, 0 }
 0x1a7   : > { %p3756_p12 = por %p329_p4, %p4564_p7  ;;  %s309_s2 = sadd.s32 4, %s302_s9 }
 0x1a8   : > { %s723_s18 = sand.u32 1, %s4557_s13   ;;  %s744_s3 = sadd.s32 %s3476_s21, %s4647_s16 }
 0x1a9   : > { %s4565_s7 = scalar_select %p3756_p12, 1, 0 }
 0x1aa   : > { %s4649_s2 = smov (!%p2026_p8, %s309_s2), %s302_s9  ;;  %s2063_s23 = sshll.u32 %s723_s18, 2 }
 0x1ab   : > { %s2069_s14 = sshll.u32 %s744_s3, 6  ;;  %s312_s11 = ssub.s32 %s4647_s16, %s4649_s2 }
 0x1ac   : > { %s313_s1 = sor.u32 %s312_s11, %s3330_s4  ;;  %s4566_s17 = sld [smem:[#allocation69_spill]] }
 0x1ad   : > { %p314_p2 = scmp.eq.s32.totalorder %s313_s1, 0  ;;  %s725_s15 = scalar_lea.vmem [#allocation12], %s2063_s23 }
 0x1ae   : > { %s748_s29 = sshll.u32 %s725_s15, 4  ;;  %p4568_p10 = scmp.lt.s32.totalorder %s3018_s12, 4  ;;  %s3768_s29 = int_to_ptr.vmem [resolvable:$true] %s748_s29 }
 0x1af   : > { %s4651_s13 = smov (!%p314_p2, %s4557_s13), %s316_s27  ;;  %s722_s4 = scalar_lea.sflag [#allocation13], %s3368_s25 }
 0x1b0   : > { %p3774_p9 = pnand %p4568_p10, %p3748_p1 }
 0x1b2   : > { %s4567_s8 = smov %s4566_s17  ;;  %s3766_s28 = scalar_lea.hbm %s4566_s17, %s2069_s14 }
 0x1b3   : > { %s2730_s16 = scalar_lea.hbm %s3766_s28, 64  ;;  %p2732_p11 = pneg %p3774_p9 }
 0x1b4   : > { %p2731_p3 = scmp.ne.s32.totalorder %s3766_s28, %s2730_s16  ;;  %s2735_s22 = scalar_lea.hbm %s4567_s8, 512 }
 0x1b5   : > { %p2736_p13 = scmp.lt.u32.totalorder %s3766_s28, %s4567_s8  ;;  %p2737_p1 = scmp.lt.u32.totalorder %s2735_s22, %s2730_s16 }
 0x1b6   : > { %p2733_p6 = pnand %p2732_p11, %p2731_p3  ;;  %p2739_p7 = scmp.lt.u32.totalorder %s2730_s16, %s3766_s28 }
 0x1b7   : > { %p2738_p4 = por %p2737_p1, %p2736_p13 }
 0x1b8   : > { %p2734_p5 = pneg %p2733_p6 }
 0x1b9   : > { %p2740_p8 = por %p2739_p7, %p2738_p4 }
 0x1bb   : > { %p2741_p2 = pnand %p2740_p8, %p2734_p5 }
 0x1bd   : > { %2744 = shalt.err (!%p2741_p2)
}
 0x1be   : > { %s2745_s25 = scalar_lea.vmem %s3768_s29, 64  ;;  %s3034_s27 = smov [#allocation12]  }
 0x1bf   : > { %p2746_p10 = scmp.ne.s32.totalorder %s3768_s29, %s2745_s25  ;;  %s2750_s3 = sshll.u32 %s3034_s27, 4  ;;  %s2751_s3 = int_to_ptr.vmem [resolvable:$false] %s2750_s3 }
 0x1c0   : > { %s2752_s23 = scalar_lea.vmem %s2751_s3, 128  ;;  %p2753_p12 = scmp.lt.s32.totalorder %s3768_s29, %s2751_s3 }
 0x1c1   : > { %p2748_p3 = pnand %p2746_p10, %p2732_p11  ;;  %p2754_p13 = scmp.lt.s32.totalorder %s2752_s23, %s2745_s25 }
 0x1c3   : > { %p2749_p6 = pneg %p2748_p3  ;;  %p2755_p1 = por %p2754_p13, %p2753_p12 }
 0x1c5   : > { %p2756_p4 = pnand %p2755_p1, %p2749_p6 }
 0x1c7   : > { %2759 = shalt.err (!%p2756_p4)
}
 0x1c8   : > { %2228 = dma.hbm_to_vmem [thread:$0]  (!%p3774_p9), %s3766_s28, 64, %s3768_s29, %s722_s4  }
 0x1c9   : > { %s4570_s14 = sld [smem:[#allocation53_spill]] }
 0x1cf   : > { %p4571_p5 = scmp.ne.s32.totalorder %s4570_s14, 0 }
 0x1d0   : > { %s4572_s11 = sld [smem:[#allocation47_spill]] (!%p4571_p5)  ;;  %s4573_s1 = sld [smem:[#allocation61_spill]] (!%p4571_p5) }
 0x1d1   : > { %757 = sbr.rel (%p4571_p5) target bundleno = 1179 (0x49b), region = 64 }
 0x1d6   : > { %s3810_s19 = sand.u32 (!%p4571_p5), 1, %s4572_s11   ;;  %p4574_p12 = scmp.ne.s32.totalorder (!%p4571_p5), %s4573_s1, 0 }
 0x1d7   : > { %s2071_s30 = sshll.u32 (!%p4571_p5), %s3810_s19, 5  ;;  %s760_s17 = scalar_lea.sflag (!%p4571_p5), [#allocation4], %s3810_s19 }
 0x1d8   : > { %s3814_s15 = scalar_lea.vmem [#allocation3], %s2071_s30 }
 0x1d9   : > { %2897 = dma.done.wait (%p4574_p12), %s760_s17, 512  }
 0x1da   : > { %2899 = vsyncadd (%p4574_p12), %s760_s17, 4294966784  ;;  %s4575_s28 = sld [smem:[#allocation44_spill]]  ;;  %s768_s21 = sand.u32 1, %s3215_s5  }
 0x1db   : > { %s4576_s29 = sld [smem:[#allocation56_spill]]  ;;  %s769_s26 = scalar_lea.sflag [#allocation7], %s768_s21 }
 0x1e0   : > { %s770_s4 = sand.u32 1, %s4575_s28  }
 0x1e1   : > { %s3822_s16 = sshll.u32 %s770_s4, 3  ;;  %p4577_p9 = scmp.ne.s32.totalorder %s4576_s29, 0 }
 0x1e2   : > { %s772_s9 = scalar_lea.vmem [#allocation6], %s3822_s16 }
 0x1e3   : > { %2901 = dma.done.wait (%p4577_p9), %s769_s26, 128  }
 0x1e4   : > { %2903 = vsyncadd (%p4577_p9), %s769_s26, 4294967168  ;;  %s4578_s22 = sld [smem:[#allocation42_spill]] }
 0x1ea   : > { %s779_s2 = sand.u32 1, %s4578_s22  }
 0x1eb   : > { %s3830_s18 = sshll.u32 %s779_s2, 3 }
 0x1ec   : > { %s781_s25 = scalar_lea.vmem [#allocation8], %s3830_s18 }
 0x1ed   : > { %2905 = dma.done.wait (%p3616_p0), %s769_s26, 128  }
 0x1ee   : > { %2907 = vsyncadd (%p3616_p0), %s769_s26, 4294967168  ;;  %s2074_s27 = sshll.u32 %s3810_s19, 3  ;;  %s787_s3 = scalar_lea.sflag [#allocation10], %s768_s21 }
 0x1ef   : > { %s3838_s23 = scalar_lea.vmem [#allocation9], %s2074_s27 }
 0x1f0   : > { %2909 = dma.done.wait (%p4574_p12), %s787_s3, 128  }
 0x1f1   : > { %2911 = vsyncadd (%p4574_p12), %s787_s3, 4294967168  ;;  %s4579_s14 = sld [smem:[#allocation39_spill]]  ;;  %p4580_p11 = scmp.ne.s32.totalorder %s4551_s24, 0 }
 0x1f7   : > { %s797_s11 = sand.u32 1, %s4579_s14  }
 0x1f8   : > { %s3845_s30 = sshll.u32 %s797_s11, 2 }
 0x1f9   : > { %s799_s17 = scalar_lea.vmem [#allocation11], %s3845_s30 }
 0x1fa   : > { %2913 = dma.done.wait (%p4580_p11), %s787_s3, 64  }
 0x1fb   : > { %2915 = vsyncadd (%p4580_p11), %s787_s3, 4294967232  ;;  %s4581_s0 = sld [smem:[#allocation37_spill]]  ;;  %s805_s1 = scalar_lea.sflag [#allocation13], %s768_s21 }
 0x1fc   : > { %p4582_p0 = scmp.ne.s32.totalorder %s4565_s7, 0 }
 0x201   : > { %s806_s28 = sand.u32 1, %s4581_s0  }
 0x202   : > { %s3853_s29 = sshll.u32 %s806_s28, 2 }
 0x203   : > { %s808_s4 = scalar_lea.vmem [#allocation12], %s3853_s29 }
 0x204   : > { %2917 = dma.done.wait (%p4582_p0), %s805_s1, 64  }
 0x205   : > { %2919 = vsyncadd (%p4582_p0), %s805_s1, 4294967232  ;;  %p4583_p7 = scmp.eq.s32.totalorder %s3215_s5, 0 }
 0x207   : > { %2921 = dma.done.wait (%p4583_p7), [#allocation13], 256   ;;  %p4584_p8 = pmov %p4583_p7 }
 0x208   : > { %p4585_p2 = pmov %p4583_p7 }
 0x209   : > { %2923 = vsyncadd (%p4584_p8), [#allocation13], 4294967040 }
 0x20a   : > { %2925 = dma.done.wait (%p4585_p2), [#allocation16], 1168   ;;  %p4586_p10 = pmov %p4585_p2 }
 0x20b   : > { %p4587_p3 = pmov %p4585_p2 }
 0x20c   : > { %2927 = vsyncadd (%p4586_p10), [#allocation16], 4294966128 }
 0x20d   : > { %2929 = dma.done.wait (%p4587_p3), [#allocation19], 32   ;;  %p4588_p6 = pmov %p4585_p2 }
 0x20e   : > { %vm1153_vm0 = vcmask 130048   ;;  %v3035_v0 = vmov 0.0   ;;  %vm3036_vm1 = vmmov 0   ;;  %v2429_v1 = vld [vmem:[#allocation14] sm:$0xff]   ;;  %v2430_v2 = vld [vmem:[#allocation14 + $0x8] sm:$0xff]   ;;  %vm1002_vm2 = vcmask 261120  }
 0x20f   : > { %2931 = vsyncadd (%p4588_p6), [#allocation19], 4294967264  ;;  %2132 = vmatprep.subr.bf16.mxu0 %v3035_v0  ;;  %1165 = vst.msk [vmem:[#allocation2 + $0x38] sm:$0xff] %vm1153_vm0, %v3035_v0  ;;  %2136 = vmatprep.mubr.msk.bf16.mxu0 %vm3036_vm1, %v3035_v0  ;;  %v966_v3 = vld [vmem:[%s799_s17] sm:$0xf]  ;;  %s4589_s5 = sld [smem:[#allocation49_spill]] }
 0x210   : > { %1167 = vst.msk [vmem:[#allocation2 + $0x58] sm:$0xff] %vm1153_vm0, %v3035_v0  ;;  %1162 = vst.msk [vmem:[#allocation2 + $0x8] sm:$0xff] %vm1153_vm0, %v3035_v0  ;;  %2133 = vmatpush3.bf16.msra.mxu0 %v2429_v1  ;;  %v967_v4 = vld [vmem:[%s3838_s23] sm:$0xf]  ;;  %v968_v5 = vld [vmem:[%s3838_s23 + $0x4] sm:$0xf] }
 0x211   : > { %1163 = vst.msk [vmem:[#allocation2 + $0x18] sm:$0xff] %vm1153_vm0, %v3035_v0  ;;  %1164 = vst.msk [vmem:[#allocation2 + $0x28] sm:$0xff] %vm1153_vm0, %v3035_v0  ;;  %2134 = vmatprep.subr.bf16.mxu0 %v3035_v0  ;;  %v969_v6 = vld [vmem:[%s808_s4] sm:$0xf]  ;;  %v974_v7 = vcombine.low %v966_v3, %v967_v4  ;;  %v3037_v11 = vmov 0   ;;  %s2083_s7 = sshll.u32 %s3810_s19, 2 }
 0x212   : > { %1166 = vst.msk [vmem:[#allocation2 + $0x48] sm:$0xff] %vm1153_vm0, %v3035_v0  ;;  %v975_v8 = vcombine.low %v968_v5, %v969_v6  ;;  %v2431_v10 = vld [vmem:[#allocation17] sm:$0xff]   ;;  %2140 = vmatprep.subr.bf16.mxu1 %v3037_v11  ;;  %v2432_v12 = vld [vmem:[#allocation17 + $0x8] sm:$0xff]   ;;  %v2084_v13 = vld [vmem:[#allocation15] ss:$0 sm:$0xff]  ;;  %vm1063_vm3 = vcmask 123904  }
 0x213   : > { %2149 = vmatpush1.bf16.msra.mxu1 %v2431_v10  ;;  %vm1102_vm4 = vcmask 1040384   ;;  %vm1107_vm5 = vcmask 1041408   ;;  %vm1112_vm6 = vcmask 1042432   ;;  %vm1117_vm7 = vcmask 1043456   ;;  %s3889_s26 = scalar_lea.vmem [#allocation22], %s2083_s7  ;;  %v960_v54 = vld [vmem:[%s772_s9] sm:$0xff] }
 0x214   : > { %2135 = vmatpush3.bf16.msra.mxu0 %v2430_v2  ;;  %v978_v9 = vpack.c.bf16 %v975_v8, %v974_v7  ;;  %2141 = vmatprep.subr.bf16.mxu1 %v3037_v11  ;;  %vm1122_vm8 = vcmask 1044480   ;;  %vm1127_vm9 = vcmask 1045504   ;;  %vm1132_vm10 = vcmask 1046528   ;;  %v961_v59 = vld [vmem:[%s3814_s15] sm:$0xff]  ;;  %v962_v60 = vld [vmem:[%s3814_s15 + $0x8] sm:$0xff]  ;;  %s3039_s9 = smov 16  }
 0x215   : > { %1566 = vmatprep.subr.bf16.mxu0 %v3037_v11  ;;  %p1143_p13 = scmp.gt.s32.totalorder %s4589_s5, 0  ;;  %p1148_p1 = scmp.lt.s32.totalorder %s4589_s5, 1  ;;  %vm1433_vm13 = vcmask 392192   ;;  %vm1442_vm14 = vcmask 523264   ;;  %vm1451_vm15 = vcmask 654336   ;;  %vm1460_vm1 = vcmask 785408  }
 0x216   : > { %s3040_s2 = smov 112   ;;  %s3041_s18 = smov 48  }
 0x217   : > { %2137 = vmatmul.mubr.msk.bf16.vlgmr.msra.gmra.mrb[0].mxu0 %vm1002_vm2, %v978_v9  ;;  %2150 = vmatpush1.bf16.msra.mxu1 %v2432_v12  ;;  %s1144_s24 = scalar_select %p1143_p13, 1, 0  ;;  %v2433_v9 = vld [vmem:[#allocation17 + $0x10] sm:$0xff]  }
 0x218   : > { %1567 = vmatpush1.bf16.msra.mxu0 %v2431_v10  ;;  %2142 = vmatprep.subr.bf16.mxu1 %v3037_v11  ;;  %s3903_s22 = scalar_select %p1148_p1, 1, 0 }
 0x219   : > { %1568 = vmatprep.subr.bf16.mxu0 %v3037_v11  ;;  %s1145_s21 = scvt.s32.f32 %s1144_s24  ;;  %s3043_s27 = smov 96  }
 0x21a   : > { %s1150_s16 = scvt.s32.f32 %s3903_s22  ;;  %s3044_s3 = smov 80  }
 0x21b   : > { %v1146_v29 = vstv %s1145_s21  ;;  %2151 = vmatpush1.bf16.msra.mxu1 %v2433_v9  ;;  %s4590_s23 = sld [smem:[#allocation50_spill]]  ;;  %s4591_s14 = sld [smem:[#allocation62_spill]] }
 0x21c   : > { %1569 = vmatpush1.bf16.msra.mxu0 %v2432_v12  ;;  %2143 = vmatprep.subr.bf16.mxu1 %v3037_v11  ;;  %s2110_s11 = sshll.u32 %s4589_s5, 1  ;;  %s1701_s0 = sshll.u32 %s3889_s26, 4  ;;  %s4226_s0 = int_to_ptr.vmem [resolvable:$true] %s1701_s0 }
 0x21d   : > { %1570 = vmatprep.subr.bf16.mxu0 %v3037_v11  ;;  %s4592_s4 = sld [smem:[#allocation76_spill]]  ;;  %s1668_s7 = scalar_lea.sflag [#allocation23], %s3810_s19 }
 0x21e   : > { %s2760_s21 = scalar_lea.vmem %s4226_s0, 64  ;;  %s3045_s22 = smov [#allocation22]  }
 0x21f   : > { %p2761_p4 = scmp.ne.s32.totalorder %s4226_s0, %s2760_s21 }
 0x220   : > { %1571 = vmatpush1.bf16.msra.mxu0 %v2433_v9  ;;  %v2439_v9 = vld [vmem:[#allocation17 + $0x40] sm:$0xff]  }
 0x221   : > { %1572 = vmatprep.subr.bf16.mxu0 %v3037_v11  ;;  %s2111_s30 = sshll.u32 %s4590_s23, 2  ;;  %p4593_p5 = scmp.ne.s32.totalorder %s4591_s14, 0 }
 0x222   : > { %s1698_s17 = sadd.s32 %s2111_s30, %s2110_s11 }
 0x223   : > { %s2112_s28 = sshll.u32 %s1698_s17, 5  ;;  %p2762_p12 = pnand %p2761_p4, %p4593_p5 }
 0x224   : > { %s4231_s24 = scalar_lea.hbm %s4592_s4, %s2112_s28 }
 0x225   : > { %p2763_p9 = pneg %p2762_p12 }
 0x2ea   : > { %v1040_v14 = vpop.f32.mrb[0].mxu0 }
 0x2eb   : > { %v1041_v15 = vadd.f32 %v2084_v13, %v1040_v14  ;;  %v2138_v16 = vpop.f32.mrb[1].mxu0  ;;  %v964_v14 = vld [vmem:[%s3814_s15 + $0x18] sm:$0xff] }
 0x2ec   : > { %v1043_v17 = vpop.f32.mrb[2].mxu0 }
 0x2ed   : > { %v1049_v18 = vcombine.high %v1041_v15, %v1041_v15  ;;  %v1053_v19 = vpack.c.bf16 %v1041_v15, %v1041_v15  ;;  %v1044_v20 = vadd.f32 %v2084_v13, %v1043_v17  ;;  %v2139_v21 = vpop.f32.mrb[3].mxu0  ;;  %v963_v13 = vld [vmem:[%s3814_s15 + $0x10] sm:$0xff]  ;;  %s3038_s15 = smov 64  }
 0x2ee   : > { %v965_v15 = vld [vmem:[%s781_s25] sm:$0xff]  ;;  %s3042_s25 = smov 32  }
 0x2ef   : > { %v1054_v22 = vpack.c.bf16 %v1049_v18, %v1049_v18  ;;  %v1057_v23 = vunpack.c.l.bf16 %v1053_v19  ;;  %v1050_v24 = vcombine.high %v1044_v20, %v1044_v20  ;;  %v1055_v25 = vpack.c.bf16 %v1044_v20, %v1044_v20 }
 0x2f1   : > { %v1058_v26 = vunpack.c.l.bf16 %v1054_v22  ;;  %1064 = vst.msk [vmem:[%s3889_s26] sm:$0x3] %vm1063_vm3, %v1054_v22  ;;  %v1070_v27 = vrot.slane %v1057_v23, 7  ;;  %v1078_v28 = vrot.slane %v1057_v23, 6  ;;  %1065 = vst.msk [vmem:[%s3889_s26 + $0x2] sm:$0x3] %vm1063_vm3, %v1055_v25  ;;  %v1056_v32 = vpack.c.bf16 %v1050_v24, %v1050_v24 }
 0x2f2   : > { %v1086_v30 = vrot.slane %v1057_v23, 5  ;;  %v1094_v31 = vrot.slane %v1057_v23, 4  ;;  %v1059_v33 = vunpack.c.l.bf16 %v1055_v25  ;;  %v1201_v24 = vlaneseq }
 0x2f3   : > { %v1071_v34 = vrot.slane %v1058_v26, 7  ;;  %v1079_v35 = vrot.slane %v1058_v26, 6  ;;  %v1087_v36 = vrot.slane %v1058_v26, 5  ;;  %v1095_v37 = vrot.slane %v1058_v26, 4 }
 0x2f4   : > { %v1103_v38 = vsel %vm1102_vm4, %v1057_v23, %v1070_v27  ;;  %v1060_v39 = vunpack.c.l.bf16 %v1056_v32  ;;  %v1072_v40 = vrot.slane %v1059_v33, 7  ;;  %v1080_v41 = vrot.slane %v1059_v33, 6  ;;  %v2435_v32 = vld [vmem:[#allocation17 + $0x20] sm:$0xff]  }
 0x2f5   : > { %v1104_v42 = vsel %vm1102_vm4, %v1058_v26, %v1071_v34  ;;  %v1108_v43 = vsel %vm1107_vm5, %v1103_v38, %v1070_v27  ;;  %v1088_v44 = vrot.slane %v1059_v33, 5  ;;  %v1096_v45 = vrot.slane %v1059_v33, 4 }
 0x2f6   : > { %v1109_v46 = vsel %vm1107_vm5, %v1104_v42, %v1071_v34  ;;  %v1113_v47 = vsel %vm1112_vm6, %v1108_v43, %v1078_v28  ;;  %v1073_v48 = vrot.slane %v1060_v39, 7  ;;  %v1081_v49 = vrot.slane %v1060_v39, 6  ;;  %v1188_v34 = vld [vmem:[#allocation2 + $0x38] sm:$0xff] }
 0x2f7   : > { %v1114_v50 = vsel %vm1112_vm6, %v1109_v46, %v1079_v35  ;;  %v1118_v51 = vsel %vm1117_vm7, %v1113_v47, %v1078_v28  ;;  %v1089_v52 = vrot.slane %v1060_v39, 5  ;;  %v1097_v53 = vrot.slane %v1060_v39, 4  ;;  %v2434_v28 = vld [vmem:[#allocation17 + $0x18] sm:$0xff]   ;;  %v2436_v42 = vld [vmem:[#allocation17 + $0x28] sm:$0xff]  }
 0x2f8   : > { %v1119_v55 = vsel %vm1117_vm7, %v1114_v50, %v1079_v35  ;;  %v1123_v56 = vsel %vm1122_vm8, %v1118_v51, %v1086_v30  ;;  %v1105_v57 = vsel %vm1102_vm4, %v1059_v33, %v1072_v40  ;;  %v1106_v58 = vsel %vm1102_vm4, %v1060_v39, %v1073_v48  ;;  %2152 = vmatpush1.bf16.msra.mxu1 %v2434_v28  ;;  %v3951_v33 = vld [vmem:[#allocation2 + $0x18] sm:$0xff] }
 0x2f9   : > { %v1124_v61 = vsel %vm1122_vm8, %v1119_v55, %v1087_v36  ;;  %v1128_v62 = vsel %vm1127_vm9, %v1123_v56, %v1086_v30  ;;  %v1110_v63 = vsel %vm1107_vm5, %v1105_v57, %v1072_v40  ;;  %v1111_v0 = vsel %vm1107_vm5, %v1106_v58, %v1073_v48  ;;  %1573 = vmatpush1.bf16.msra.mxu0 %v2434_v28  ;;  %v3944_v30 = vld [vmem:[#allocation2 + $0x28] sm:$0xff] }
 0x2fa   : > { %v1129_v1 = vsel %vm1127_vm9, %v1124_v61, %v1087_v36  ;;  %v1133_v2 = vsel %vm1132_vm10, %v1128_v62, %v1094_v31  ;;  %v1115_v3 = vsel %vm1112_vm6, %v1110_v63, %v1080_v41  ;;  %v1116_v4 = vsel %vm1112_vm6, %v1111_v0, %v1081_v49  ;;  %2144 = vmatprep.subr.bf16.mxu1 %v3037_v11  ;;  %v4013_v58 = vld [vmem:[#allocation2 + $0x8] sm:$0xff] }
 0x2fb   : > { %v1134_v5 = vsel %vm1132_vm10, %v1129_v1, %v1095_v37  ;;  %v1141_v6 = vadd.f32 %v1133_v2, %v960_v54  ;;  %v1120_v7 = vsel %vm1117_vm7, %v1115_v3, %v1080_v41  ;;  %v1121_v8 = vsel %vm1117_vm7, %v1116_v4, %v1081_v49  ;;  %1574 = vmatprep.subr.bf16.mxu0 %v3037_v11  ;;  %v2437_v49 = vld [vmem:[#allocation17 + $0x30] sm:$0xff]   ;;  %v2438_v63 = vld [vmem:[#allocation17 + $0x38] sm:$0xff]   ;;  %v4029_v3 = vld [vmem:[#allocation2 + $0x58] sm:$0xff] }
 0x2fc   : > { %v1137_v10 = vadd.f32 %v1134_v5, %v961_v59  ;;  %v1138_v12 = vadd.f32 %v1134_v5, %v962_v60  ;;  %v1125_v16 = vsel %vm1122_vm8, %v1120_v7, %v1088_v44  ;;  %v1126_v17 = vsel %vm1122_vm8, %v1121_v8, %v1089_v52  ;;  %2153 = vmatpush1.bf16.msra.mxu1 %v2435_v32 }
 0x2fd   : > { %v1147_v18 = vmul.f32 %v1146_v29, %v1141_v6  ;;  %v1130_v19 = vsel %vm1127_vm9, %v1125_v16, %v1088_v44  ;;  %v1131_v20 = vsel %vm1127_vm9, %v1126_v17, %v1089_v52  ;;  %v1151_v23 = vstv %s1150_s16  ;;  %1575 = vmatpush1.bf16.msra.mxu0 %v2435_v32  ;;  %2145 = vmatprep.subr.bf16.mxu1 %v3037_v11  ;;  %s2764_s16 = sshll.u32 %s3045_s22, 4  ;;  %s2765_s16 = int_to_ptr.vmem [resolvable:$false] %s2764_s16 }
 0x2fe   : > { %1156 = vst.msk [vmem:[#allocation2 + $0x10] sm:$0xff] %vm1153_vm0, %v1137_v10  ;;  %1157 = vst.msk [vmem:[#allocation2 + $0x20] sm:$0xff] %vm1153_vm0, %v1138_v12  ;;  %v1135_v21 = vsel %vm1132_vm10, %v1130_v19, %v1096_v45  ;;  %v1136_v22 = vsel %vm1132_vm10, %v1131_v20, %v1097_v53  ;;  %v3946_v31 = vshrl.u32 %v1201_v24, 7  ;;  %v1268_v36 = vrot.slane %v3944_v30, 1  ;;  %1576 = vmatprep.subr.bf16.mxu0 %v3037_v11  ;;  %v3995_v53 = vld [vmem:[#allocation2 + $0x48] sm:$0xff]  ;;  %s2766_s26 = scalar_lea.vmem %s2765_s16, 128  ;;  %p2767_p11 = scmp.lt.s32.totalorder %s4226_s0, %s2765_s16 }
 0x2ff   : > { %1154 = vst.msk [vmem:[#allocation2] sm:$0xff] %vm1153_vm0, %v1147_v18  ;;  %v1139_v25 = vadd.f32 %v1135_v21, %v963_v13  ;;  %v1140_v26 = vadd.f32 %v1135_v21, %v964_v14  ;;  %v1142_v27 = vadd.f32 %v1136_v22, %v965_v15  ;;  %v3965_v41 = vrot.slane %v1188_v34, 1  ;;  %p2768_p0 = scmp.lt.s32.totalorder %s2766_s26, %s2760_s21 }
 0x300   : > { %vm1228_vm11 = vcmp.lt.s32.totalorder %v3946_v31, 7  ;;  %2154 = vmatpush1.bf16.msra.mxu1 %v2436_v42  ;;  %v1244_v59 = vrot.slane %v3944_v30, 7  ;;  %v1196_v61 = vrot.slane %v3951_v33, 7  ;;  %v1194_v1 = vrot.slane %v4013_v58, 7 }
 0x301   : > { %v1152_v29 = vmul.f32 %v1151_v23, %v1142_v27  ;;  %1158 = vst.msk [vmem:[#allocation2 + $0x30] sm:$0xff] %vm1153_vm0, %v1139_v25  ;;  %1159 = vst.msk [vmem:[#allocation2 + $0x40] sm:$0xff] %vm1153_vm0, %v1140_v26  ;;  %1577 = vmatpush1.bf16.msra.mxu0 %v2436_v42  ;;  %2146 = vmatprep.subr.bf16.mxu1 %v3037_v11  ;;  %vm1203_vm12 = vcmp.lt.s32.totalorder %v3946_v31, 1  ;;  %v1223_v4 = vrot.slane %v3951_v33, 1  ;;  %v1246_v5 = vrot.slane %v1188_v34, 7  ;;  %p2769_p7 = por %p2768_p0, %p2767_p11 }
 0x302   : > { %1578 = vmatprep.subr.bf16.mxu0 %v3037_v11  ;;  %v4037_v8 = vrot.slane %v3995_v53, 1  ;;  %v1316_v13 = vrot.slane %v4029_v3, 1  ;;  %vm1469_vm3 = vcmask 916480  }
 0x303   : > { %1161 = vst.msk [vmem:[#allocation2 + $0x50] sm:$0xff] %vm1153_vm0, %v1152_v29  ;;  %p2770_p8 = pnand %p2769_p7, %p2763_p9 }
 0x304   : > { %2155 = vmatpush1.bf16.msra.mxu1 %v2437_v49 }
 0x305   : > { %v1178_v35 = vld [vmem:[#allocation2 + $0x20] sm:$0xff]  ;;  %v1170_v37 = vld [vmem:[#allocation2 + $0x10] sm:$0xff]  ;;  %2147 = vmatprep.subr.bf16.mxu1 %v3037_v11  ;;  %1579 = vmatpush1.bf16.msra.mxu0 %v2437_v49 }
 0x306   : > { %v3955_v38 = vpack.c.bf16 %v3944_v30, %v1178_v35  ;;  %v3957_v39 = vrot.slane %v1178_v35, 1  ;;  %v3960_v40 = vpack.c.bf16 %v3951_v33, %v1170_v37  ;;  %v4011_v57 = vld [vmem:[#allocation2] sm:$0xff]  ;;  %v4017_v60 = vrot.slane %v1178_v35, 7  ;;  %1580 = vmatprep.subr.bf16.mxu0 %v3037_v11 }
 0x307   : > { %v4024_v0 = vrot.slane %v1170_v37, 7  ;;  %v1193_v2 = vrot.slane %v4011_v57, 7  ;;  %v1216_v6 = vpack.c.bf16 %v4013_v58, %v4011_v57  ;;  %v4034_v7 = vrot.slane %v1170_v37, 1 }
 0x308   : > { %1371 = vrot.lane.b32.xlu1 %v3955_v38, %s3038_s15  ;;  %1335 = vrot.lane.b32.xlu0 %v3960_v40, %s3039_s9  ;;  %v3971_v43 = vld [vmem:[#allocation2 + $0x30] sm:$0xff]  ;;  %v3973_v44 = vld [vmem:[#allocation2 + $0x40] sm:$0xff]  ;;  %v1323_v46 = vsel %vm1228_vm11, %v3957_v39, %v1268_v36  ;;  %v4046_v12 = vsel %vm1203_vm12, %v4017_v60, %v1244_v59  ;;  %v1254_v14 = vsel %vm1203_vm12, %v1196_v61, %v4017_v60  ;;  %v1290_v35 = vrot.slane %v3995_v53, 7 }
 0x309   : > { %v1311_v45 = vrot.slane %v3971_v43, 1  ;;  %v1313_v47 = vrot.slane %v3973_v44, 1  ;;  %v1306_v48 = vpack.c.bf16 %v1188_v34, %v3971_v43  ;;  %v1307_v56 = vpack.c.bf16 %v3995_v53, %v3973_v44  ;;  %2156 = vmatpush1.bf16.msra.mxu1 %v2438_v63  ;;  %1581 = vmatpush1.bf16.msra.mxu0 %v2438_v63 }
 0x30a   : > { %v4022_v62 = vld [vmem:[#allocation2 + $0x50] sm:$0xff]  ;;  %2148 = vmatprep.subr.bf16.mxu1 %v3037_v11  ;;  %v4055_v15 = vsel %vm1203_vm12, %v4024_v0, %v1196_v61  ;;  %v4060_v16 = vsel %vm1203_vm12, %v1194_v1, %v4024_v0  ;;  %v4064_v17 = vsel %vm1203_vm12, %v1193_v2, %v1194_v1  ;;  %v1245_v18 = vrot.slane %v3971_v43, 7  ;;  %1582 = vmatprep.subr.bf16.mxu0 %v3037_v11 }
 0x30b   : > { %v1322_v50 = vsel %vm1228_vm11, %v1268_v36, %v1311_v45  ;;  %v1320_v51 = vsel %vm1228_vm11, %v3965_v41, %v1313_v47  ;;  %v3993_v52 = vsel %vm1228_vm11, %v1311_v45, %v3965_v41  ;;  %v1315_v10 = vrot.slane %v4022_v62, 1 }
 0x30c   : > { %v3997_v54 = vpack.c.bf16 %v1322_v50, %v1323_v46  ;;  %v4000_v55 = vpack.c.bf16 %v1320_v51, %v3993_v52  ;;  %1337 = vrot.lane.b32.xlu1 %v3955_v38, %s3039_s9  ;;  %1407 = vrot.lane.b32.xlu0 %v1306_v48, %s3040_s2  ;;  %v1232_v19 = vsel %vm1228_vm11, %v1223_v4, %v3957_v39  ;;  %v1247_v36 = vrot.slane %v3973_v44, 7 }
 0x30d   : > { %v1213_v20 = vpack.c.bf16 %v4055_v15, %v4060_v16  ;;  %v4075_v21 = vsel %vm1203_vm12, %v1246_v5, %v1193_v2  ;;  %2157 = vmatpush1.bf16.msra.mxu1 %v2439_v9  ;;  %v1233_v22 = vsel %vm1228_vm11, %v4034_v7, %v1223_v4  ;;  %v4085_v24 = vsel %vm1228_vm11, %v4037_v8, %v1315_v10 }
 0x30e   : > { %2099 = vmatprep.mubr.msk.bf16.mxu0 %vm1153_vm0, %v3997_v54  ;;  %2100 = vmatprep.mubr.msk.bf16.mxu1 %vm1153_vm0, %v4000_v55  ;;  %v1212_v23 = vpack.c.bf16 %v4064_v17, %v4075_v21  ;;  %v4092_v25 = vsel %vm1228_vm11, %v1313_v47, %v4037_v8  ;;  %v4102_v27 = vsel %vm1228_vm11, %v1315_v10, %v1316_v13  ;;  %v1220_v37 = vrot.slane %v4011_v57, 1 }
 0x30f   : > { %v1327_v26 = vpack.c.bf16 %v4085_v24, %v4092_v25  ;;  %v4107_v28 = vsel %vm1228_vm11, %v1316_v13, %v3957_v39  ;;  %v4112_v29 = vpack.c.bf16 %v4046_v12, %v1254_v14  ;;  %v1238_v30 = vpack.c.bf16 %v1232_v19, %v1233_v22  ;;  %1583 = vmatpush1.bf16.msra.mxu0 %v2439_v9 }
 0x310   : > { %1409 = vrot.lane.b32.xlu1 %v1307_v56, %s3040_s2  ;;  %1373 = vrot.lane.b32.xlu0 %v1306_v48, %s3038_s15  ;;  %v1328_v11 = vpack.c.bf16 %v4107_v28, %v4102_v27  ;;  %v1297_v32 = vsel %vm1203_vm12, %v1245_v18, %v1246_v5  ;;  %v1298_v33 = vsel %vm1203_vm12, %v1244_v59, %v1245_v18  ;;  %v1221_v39 = vrot.slane %v4013_v58, 1 }
 0x311   : > { %v4121_v34 = vpack.c.bf16 %v1297_v32, %v1298_v33  ;;  %v1296_v42 = vsel %vm1203_vm12, %v1246_v5, %v1247_v36  ;;  %v1236_v44 = vsel %vm1228_vm11, %v3965_v41, %v1220_v37  ;;  %v1256_v49 = vsel %vm1203_vm12, %v1290_v35, %v4024_v0 }
 0x312   : > { %v1234_v45 = vsel %vm1228_vm11, %v1221_v39, %v4034_v7  ;;  %v1235_v46 = vsel %vm1228_vm11, %v1220_v37, %v1221_v39  ;;  %v1240_v47 = vpack.c.bf16 %v1236_v44, %v3993_v52  ;;  %v1257_v41 = vpack.c.bf16 %v4055_v15, %v1256_v49 }
 0x313   : > { %v1280_v50 = vsel %vm1228_vm11, %v4037_v8, %v4034_v7  ;;  %v1291_v51 = vrot.slane %v4022_v62, 7  ;;  %v1292_v52 = vrot.slane %v4029_v3, 7  ;;  %v1308_v59 = vpack.c.bf16 %v4029_v3, %v4022_v62 }
 0x314   : > { %1339 = vrot.lane.b32.xlu1 %v1306_v48, %s3039_s9  ;;  %1333 = vrot.lane.b32.xlu0 %v1216_v6, %s3039_s9  ;;  %v1237_v48 = vpack.c.bf16 %v1234_v45, %v1235_v46  ;;  %v1284_v53 = vpack.c.bf16 %v1280_v50, %v4092_v25 }
 0x318   : > { %1375 = vrot.lane.b32.xlu1 %v1307_v56, %s3038_s15  ;;  %1369 = vrot.lane.b32.xlu0 %v3960_v40, %s3038_s15  ;;  %v1295_v40 = vsel %vm1203_vm12, %v1247_v36, %v1290_v35  ;;  %v1300_v56 = vsel %vm1203_vm12, %v1292_v52, %v4017_v60 }
 0x319   : > { %v1303_v43 = vpack.c.bf16 %v1295_v40, %v1296_v42  ;;  %v1301_v58 = vpack.c.bf16 %v4046_v12, %v1300_v56 }
 0x31c   : > { %1359 = vrot.lane.b32.xlu1 %v4112_v29, %s3041_s18  ;;  %1347 = vrot.lane.b32.xlu0 %v1238_v30, %s3042_s25 }
 0x320   : > { %1395 = vrot.lane.b32.xlu1 %v4121_v34, %s3043_s27  ;;  %1383 = vrot.lane.b32.xlu0 %v3997_v54, %s3044_s3 }
 0x324   : > { %1361 = vrot.lane.b32.xlu1 %v4121_v34, %s3041_s18  ;;  %1349 = vrot.lane.b32.xlu0 %v3997_v54, %s3042_s25  ;;  %v1293_v54 = vsel %vm1203_vm12, %v1291_v51, %v1292_v52 }
 0x328   : > { %1385 = vrot.lane.b32.xlu1 %v4000_v55, %s3044_s3  ;;  %1397 = vrot.lane.b32.xlu0 %v1303_v43, %s3043_s27  ;;  %v1294_v55 = vsel %vm1203_vm12, %v1290_v35, %v1291_v51 }
 0x329   : > { %v1304_v57 = vpack.c.bf16 %v1293_v54, %v1294_v55 }
 0x32c   : > { %1351 = vrot.lane.b32.xlu1 %v1240_v47, %s3042_s25  ;;  %1345 = vrot.lane.b32.xlu0 %v1237_v48, %s3042_s25 }
 0x330   : > { %1363 = vrot.lane.b32.xlu1 %v1303_v43, %s3041_s18  ;;  %1357 = vrot.lane.b32.xlu0 %v1257_v41, %s3041_s18 }
 0x334   : > { %1387 = vrot.lane.b32.xlu1 %v1284_v53, %s3044_s3  ;;  %1381 = vrot.lane.b32.xlu0 %v1238_v30, %s3044_s3 }
 0x338   : > { %1399 = vrot.lane.b32.xlu1 %v1304_v57, %s3043_s27  ;;  %1393 = vrot.lane.b32.xlu0 %v1301_v58, %s3043_s27 }
 0x33c   : > { %1411 = vrot.lane.b32.xlu1 %v1308_v59, %s3040_s2  ;;  %1405 = vrot.lane.b32.xlu0 %v3955_v38, %s3040_s2 }
 0x37a   : > { %v1372_v61 = vpop.permute.xlu1 %1371  ;;  %v1336_v31 = vpop.permute.xlu0 %1335 }
 0x37b   : > { %v1418_v62 = vsel %vm1153_vm0, %v1213_v20, %v1336_v31 }
 0x37e   : > { %v1338_v60 = vpop.permute.xlu1 %1337  ;;  %v1408_v63 = vpop.permute.xlu0 %1407 }
 0x37f   : > { %v1421_v16 = vsel %vm1153_vm0, %v4112_v29, %v1338_v60 }
 0x382   : > { %v1410_v0 = vpop.permute.xlu1 %1409  ;;  %v1374_v1 = vpop.permute.xlu0 %1373 }
 0x386   : > { %v1340_v2 = vpop.permute.xlu1 %1339  ;;  %v1334_v4 = vpop.permute.xlu0 %1333 }
 0x387   : > { %v1424_v42 = vsel %vm1153_vm0, %v4121_v34, %v1340_v2  ;;  %v1415_v43 = vsel %vm1153_vm0, %v1212_v23, %v1334_v4 }
 0x38a   : > { %v1376_v5 = vpop.permute.xlu1 %1375  ;;  %v1370_v6 = vpop.permute.xlu0 %1369 }
 0x38e   : > { %v1360_v3 = vpop.permute.xlu1 %1359  ;;  %v1348_v7 = vpop.permute.xlu0 %1347 }
 0x38f   : > { %v1428_v38 = vsel %vm1002_vm2, %v1418_v62, %v1348_v7 }
 0x390   : > { %v1437_v8 = vsel %vm1433_vm13, %v1428_v38, %v1360_v3 }
 0x391   : > { %v1446_v9 = vsel %vm1442_vm14, %v1437_v8, %v1372_v61 }
 0x392   : > { %v1396_v10 = vpop.permute.xlu1 %1395  ;;  %v1384_v12 = vpop.permute.xlu0 %1383 }
 0x393   : > { %v1455_v13 = vsel %vm1451_vm15, %v1446_v9, %v1384_v12 }
 0x394   : > { %v1464_v14 = vsel %vm1460_vm1, %v1455_v13, %v1396_v10 }
 0x395   : > { %v1474_v15 = vsel %vm1469_vm3, %v1464_v14, %v1408_v63 }
 0x396   : > { %v1362_v18 = vpop.permute.xlu1 %1361  ;;  %1606 = vmatmul.mubr.bf16.vlgmr.msra.gmra.mrb[0].mxu1 %v1474_v15  ;;  %v1350_v19 = vpop.permute.xlu0 %1349 }
 0x397   : > { %v1430_v20 = vsel %vm1002_vm2, %v1421_v16, %v1350_v19  ;;  %2101 = vmatprep.mubr.msk.bf16.mxu1 %vm1153_vm0, %v1327_v26 }
 0x398   : > { %v1439_v22 = vsel %vm1433_vm13, %v1430_v20, %v1362_v18 }
 0x399   : > { %v1448_v30 = vsel %vm1442_vm14, %v1439_v22, %v1374_v1 }
 0x39a   : > { %v1386_v32 = vpop.permute.xlu1 %1385  ;;  %v1398_v33 = vpop.permute.xlu0 %1397 }
 0x39b   : > { %v1457_v35 = vsel %vm1451_vm15, %v1448_v30, %v1386_v32 }
 0x39c   : > { %v1466_v29 = vsel %vm1460_vm1, %v1457_v35, %v1398_v33 }
 0x39d   : > { %v1477_v36 = vsel %vm1469_vm3, %v1466_v29, %v1410_v0 }
 0x39e   : > { %v1352_v37 = vpop.permute.xlu1 %1351  ;;  %1613 = vmatmul.mubr.bf16.gmra.mrb[4].mxu1 %v1477_v36  ;;  %v1346_v39 = vpop.permute.xlu0 %1345 }
 0x39f   : > { %2102 = vmatprep.mubr.msk.bf16.mxu1 %vm1153_vm0, %v1328_v11  ;;  %v1432_v44 = vsel %vm1002_vm2, %v1424_v42, %v1352_v37  ;;  %v1426_v45 = vsel %vm1002_vm2, %v1415_v43, %v1346_v39 }
 0x3a2   : > { %v1364_v24 = vpop.permute.xlu1 %1363  ;;  %v1358_v25 = vpop.permute.xlu0 %1357 }
 0x3a3   : > { %v1441_v27 = vsel %vm1433_vm13, %v1432_v44, %v1364_v24  ;;  %v1435_v28 = vsel %vm1433_vm13, %v1426_v45, %v1358_v25 }
 0x3a4   : > { %v1450_v34 = vsel %vm1442_vm14, %v1441_v27, %v1376_v5  ;;  %v1444_v47 = vsel %vm1442_vm14, %v1435_v28, %v1370_v6 }
 0x3a6   : > { %v1388_v26 = vpop.permute.xlu1 %1387  ;;  %v1382_v40 = vpop.permute.xlu0 %1381 }
 0x3a7   : > { %v1459_v17 = vsel %vm1451_vm15, %v1450_v34, %v1388_v26  ;;  %v1453_v21 = vsel %vm1451_vm15, %v1444_v47, %v1382_v40 }
 0x3aa   : > { %v1400_v11 = vpop.permute.xlu1 %1399  ;;  %v1394_v46 = vpop.permute.xlu0 %1393 }
 0x3ab   : > { %v1468_v23 = vsel %vm1460_vm1, %v1459_v17, %v1400_v11  ;;  %v1462_v48 = vsel %vm1460_vm1, %v1453_v21, %v1394_v46 }
 0x3ae   : > { %v1412_v49 = vpop.permute.xlu1 %1411  ;;  %v1406_v41 = vpop.permute.xlu0 %1405 }
 0x3af   : > { %v1471_v50 = vsel %vm1469_vm3, %v1462_v48, %v1406_v41  ;;  %v1480_v51 = vsel %vm1469_vm3, %v1468_v23, %v1412_v49 }
 0x3b0   : > { %1599 = vmatmul.mubr.bf16.vlgmr.msra.gmra.mrb[4].mxu0 %v1471_v50  ;;  %1620 = vmatmul.mubr.bf16.gmra.mrb[8].mxu1 %v1480_v51 }
 0x3b1   : > { %2773 = shalt.err (!%p2770_p8)
}
 0x3b2   : > { %s2774_s9 = scalar_lea.hbm %s4231_s24, 64  ;;  %s2778_s27 = scalar_lea.hbm %s4592_s4, 256 }
 0x3b3   : > { %p2775_p2 = scmp.ne.s32.totalorder %s4231_s24, %s2774_s9  ;;  %p2779_p6 = scmp.lt.u32.totalorder %s4231_s24, %s4592_s4 }
 0x3b4   : > { %p2780_p13 = scmp.lt.u32.totalorder %s2778_s27, %s2774_s9  ;;  %p2782_p4 = scmp.lt.u32.totalorder %s2774_s9, %s4231_s24 }
 0x3b5   : > { %p2776_p10 = pnand %p2775_p2, %p4593_p5 }
 0x3b6   : > { %p2781_p1 = por %p2780_p13, %p2779_p6 }
 0x3b7   : > { %p2777_p3 = pneg %p2776_p10 }
 0x3b8   : > { %p2783_p12 = por %p2782_p4, %p2781_p1 }
 0x3ba   : > { %p2784_p9 = pnand %p2783_p12, %p2777_p3 }
 0x3bc   : > { %2787 = shalt.err (!%p2784_p9)
}
 0x3bd   : > { %s3046_s30 = smov 2   ;;  %v2103_v52 = vld [vmem:[#allocation18] ss:$0 sm:$0xff]  ;;  %v2104_v54 = vld [vmem:[#allocation20] ss:$0 sm:$0xff]  ;;  %s2082_s17 = sshll.u32 %s3810_s19, 4 }
 0x3be   : > { %2191 = dma.vmem_to_hbm [thread:$0]  (%p4593_p5), %s4226_s0, 64, %s4231_s24, %s1668_s7, %s3042_s25, %s3042_s25, %s3046_s30   ;;  %vm1657_vm0 = vcmask 125952  }
 0x3bf   : > { %s4260_s28 = scalar_lea.vmem [#allocation21], %s2082_s17  ;;  %s2107_s25 = sshll.u32 %s4589_s5, 2 }
 0x3c0   : > { %s2108_s0 = sshll.u32 %s4590_s23, 3  ;;  %s1683_s1 = sshll.u32 %s4260_s28, 4  ;;  %s4269_s1 = int_to_ptr.vmem [resolvable:$true] %s1683_s1 }
 0x3c1   : > { %s1680_s29 = sadd.s32 %s2108_s0, %s2107_s25  ;;  %s4594_s7 = sld [smem:[#allocation75_spill]] }
 0x3c2   : > { %s2109_s5 = sshll.u32 %s1680_s29, 6  ;;  %s1663_s22 = scalar_lea.sflag [#allocation5], %s3810_s19 }
 0x3c3   : > { %s2788_s16 = scalar_lea.vmem %s4269_s1, 256  ;;  %s3047_s26 = smov [#allocation21]  }
 0x3c4   : > { %p2789_p11 = scmp.ne.s32.totalorder %s4269_s1, %s2788_s16  ;;  %s2792_s9 = sshll.u32 %s3047_s26, 4  ;;  %s2793_s9 = int_to_ptr.vmem [resolvable:$false] %s2792_s9 }
 0x3c5   : > { %s2794_s2 = scalar_lea.vmem %s2793_s9, 512  ;;  %p2795_p8 = scmp.lt.s32.totalorder %s4269_s1, %s2793_s9 }
 0x3c6   : > { %p2790_p0 = pnand %p2789_p11, %p4593_p5  ;;  %p2796_p2 = scmp.lt.s32.totalorder %s2794_s2, %s2788_s16 }
 0x3c7   : > { %s4274_s21 = scalar_lea.hbm %s4594_s7, %s2109_s5 }
 0x3c8   : > { %p2791_p7 = pneg %p2790_p0  ;;  %p2797_p10 = por %p2796_p2, %p2795_p8 }
 0x3ca   : > { %p2798_p3 = pnand %p2797_p10, %p2791_p7 }
 0x469   : > { %v1607_v53 = vpop.f32.mrb[0].mxu1 }
 0x46a   : > { %v1635_v55 = vmul.f32 %v2103_v52, %v1607_v53  ;;  %v1609_v56 = vpop.f32.mrb[1].mxu1 }
 0x46b   : > { %v1610_v57 = vpop.f32.mrb[2].mxu1 }
 0x46c   : > { %v1646_v58 = vadd.f32 %v2104_v54, %v1635_v55  ;;  %v1611_v59 = vpop.f32.mrb[3].mxu1 }
 0x46e   : > { %v1650_v61 = vmax.f32 %v1646_v58, 0.0 }
 0x470   : > { %v1654_v31 = vpack.c.bf16 %v1650_v61, %v1650_v61 }
 0x471   : > { %v1614_v60 = vpop.f32.mrb[4].mxu1 }
 0x472   : > { %1659 = vst.msk [vmem:[%s4260_s28 + $0x4] sm:$0xf] %vm1657_vm0, %v1654_v31  ;;  %v1636_v63 = vmul.f32 %v2103_v52, %v1614_v60  ;;  %v1616_v0 = vpop.f32.mrb[5].mxu1 }
 0x473   : > { %v1617_v1 = vpop.f32.mrb[6].mxu1 }
 0x474   : > { %v1647_v2 = vadd.f32 %v2104_v54, %v1636_v63  ;;  %v1618_v4 = vpop.f32.mrb[7].mxu1 }
 0x476   : > { %v1651_v5 = vmax.f32 %v1647_v2, 0.0 }
 0x478   : > { %v1655_v6 = vpack.c.bf16 %v1651_v5, %v1651_v5 }
 0x47a   : > { %1660 = vst.msk [vmem:[%s4260_s28 + $0x8] sm:$0xf] %vm1657_vm0, %v1655_v6 }
 0x483   : > { %v1600_v62 = vpop.f32.mrb[4].mxu0  ;;  %v1621_v3 = vpop.f32.mrb[8].mxu1 }
 0x484   : > { %v1634_v7 = vmul.f32 %v2103_v52, %v1600_v62  ;;  %v1637_v38 = vmul.f32 %v2103_v52, %v1621_v3  ;;  %v1602_v8 = vpop.f32.mrb[5].mxu0  ;;  %v1623_v9 = vpop.f32.mrb[9].mxu1 }
 0x485   : > { %v1603_v10 = vpop.f32.mrb[6].mxu0  ;;  %v1624_v12 = vpop.f32.mrb[10].mxu1 }
 0x486   : > { %v1645_v13 = vadd.f32 %v2104_v54, %v1634_v7  ;;  %v1648_v14 = vadd.f32 %v2104_v54, %v1637_v38  ;;  %v1604_v15 = vpop.f32.mrb[7].mxu0  ;;  %v1625_v16 = vpop.f32.mrb[11].mxu1 }
 0x488   : > { %v1649_v18 = vmax.f32 %v1645_v13, 0.0  ;;  %v1652_v19 = vmax.f32 %v1648_v14, 0.0 }
 0x48a   : > { %v1653_v20 = vpack.c.bf16 %v1649_v18, %v1649_v18  ;;  %v1656_v22 = vpack.c.bf16 %v1652_v19, %v1652_v19 }
 0x48c   : > { %1658 = vst.msk [vmem:[%s4260_s28] sm:$0xf] %vm1657_vm0, %v1653_v20  ;;  %1661 = vst.msk [vmem:[%s4260_s28 + $0xc] sm:$0xf] %vm1657_vm0, %v1656_v22 }
 0x48d   : > { %2801 = shalt.err (!%p2798_p3)
}
 0x48e   : > { %s2802_s18 = scalar_lea.hbm %s4274_s21, 256  ;;  %s2806_s11 = scalar_lea.hbm %s4594_s7, 1024 }
 0x48f   : > { %p2803_p6 = scmp.ne.s32.totalorder %s4274_s21, %s2802_s18  ;;  %p2807_p4 = scmp.lt.u32.totalorder %s4274_s21, %s4594_s7 }
 0x490   : > { %p2808_p12 = scmp.lt.u32.totalorder %s2806_s11, %s2802_s18  ;;  %p2810_p11 = scmp.lt.u32.totalorder %s2802_s18, %s4274_s21 }
 0x491   : > { %p2804_p13 = pnand %p2803_p6, %p4593_p5 }
 0x492   : > { %p2809_p9 = por %p2808_p12, %p2807_p4 }
 0x493   : > { %p2805_p1 = pneg %p2804_p13 }
 0x494   : > { %p2811_p0 = por %p2810_p11, %p2809_p9 }
 0x496   : > { %p2812_p7 = pnand %p2811_p0, %p2805_p1 }
 0x498   : > { %2815 = shalt.err (!%p2812_p7)
}
 0x499   : > { %s3048_s28 = smov 4  }
 0x49a   : > { %2190 = dma.vmem_to_hbm [thread:$0]  (%p4593_p5), %s4269_s1, 256, %s4274_s21, %s1663_s22, %s3038_s15, %s3038_s15, %s3048_s28  }
 0x49b PF: > { %s4595_s25 = sld [smem:[#allocation46_spill]]  ;;  %s4596_s0 = sld [smem:[#allocation63_spill]] }
 0x49c   : > { %p2247_p8 = scmp.ge.s32.totalorder %s3018_s12, 2 }
 0x4a1   : > { %s1716_s29 = sand.u32 1, %s4595_s25   ;;  %p4597_p2 = scmp.ne.s32.totalorder %s4596_s0, 0 }
 0x4a2   : > { %s1717_s5 = scalar_lea.sflag [#allocation5], %s1716_s29 }
 0x4a3   : > { %p2230_p10 = pnand %p2247_p8, %p4597_p2 }
 0x4a5   : > { %2933 = dma.done.wait (!%p2230_p10), %s1717_s5, 256  }
 0x4a6   : > { %2935 = vsyncadd (!%p2230_p10), %s1717_s5, 4294967040  ;;  %s1726_s23 = scalar_lea.sflag [#allocation23], %s1716_s29 }
 0x4a7   : > { %2937 = dma.done.wait (!%p2230_p10), %s1726_s23, 64  }
 0x4a8   : > { %2939 = vsyncadd (!%p2230_p10), %s1726_s23, 4294967232  ;;  %s43_s12 = sadd.s32 1, %s3018_s12   ;;  %s4599_s21 = sld [smem:[#allocation37_spill]] }
 0x4a9   : > { %p4311_p3 = scmp.ge.s32.totalorder %s43_s12, 6   ;;  %s4600_s22 = sld [smem:[#allocation38_spill]] }
 0x4aa   : > { %s4601_s24 = sld [smem:[#allocation39_spill]]  ;;  %s4602_s25 = sld [smem:[#allocation40_spill]] }
 0x4ab   : > { %s4603_s27 = sld [smem:[#allocation42_spill]]  ;;  %s4604_s28 = sld [smem:[#allocation43_spill]] }
 0x4ac   : > { %s4605_s30 = sld [smem:[#allocation44_spill]]  ;;  %s4606_s15 = sld [smem:[#allocation45_spill]] }
 0x4ad   : > { %s4607_s14 = sld [smem:[#allocation59_spill]]  ;;  %s4608_s1 = sld [smem:[#allocation47_spill]] }
 0x4ae   : > { %s4609_s16 = sld [smem:[#allocation48_spill]]  ;;  %s4610_s17 = sld [smem:[#allocation60_spill]] }
 0x4af   : > { %s4611_s18 = sld [smem:[#allocation51_spill]]  ;;  %s4612_s9 = sld [smem:[#allocation52_spill]] }
 0x4b0   : > { %s4613_s2 = sld [smem:[#allocation54_spill]]  ;;  %s4614_s23 = smov %s4651_s13 }
 0x4b1   : > { %s4615_s11 = sld [smem:[#allocation55_spill]]  ;;  %s4617_s26 = smov %s4645_s6 }
 0x4b2   : > { %s4618_s29 = smov %s4639_s20  ;;  %s4619_s13 = smov %s4606_s15 }
 0x4b3   : > { %s4620_s15 = smov %s4608_s1  ;;  %42 = sbr.rel (!%p4311_p3) target bundleno = 38 (0x26), region = 210 }
 0x4b5   : > { %s4621_s19 = smov %s4612_s9 }
 0x4b6   : > { %s4622_s20 = smov %s4613_s2 }
 0x4b7   : > { %4623 = sst [smem:[#allocation35_spill]] %s4615_s11 }
 0x4ba   :  { %1731 = vsyncpa [#allocation4], 1 }
 0x4bb   :  { %1733 = vsyncpa [#allocation4 + $0x1], 1 }
 0x4bc   :  { %1734 = vsyncpa [#allocation7], 1 }
 0x4bd   :  { %1736 = vsyncpa [#allocation7 + $0x1], 1 }
 0x4be   :  { %1737 = vsyncpa [#allocation10], 1 }
 0x4bf   :  { %1739 = vsyncpa [#allocation10 + $0x1], 1 }
 0x4c0   :  { %1740 = vsyncpa [#allocation13], 1 }
 0x4c1   :  { %1742 = vsyncpa [#allocation13 + $0x1], 1 }
 0x4c2   :  { %1743 = vsyncpa [#allocation16], 1 }
 0x4c3   :  { %1744 = vsyncpa [#allocation19], 1 }
 0x4c4   :  { %1745 = vsyncpa [#allocation5], 1 }
 0x4c5   :  { %1747 = vsyncpa [#allocation5 + $0x1], 1 }
 0x4c6   :  { %1748 = vsyncpa [#allocation23], 1 }
 0x4c7   :  { %1750 = vsyncpa [#allocation23 + $0x1], 1 }

</bundles_post_ra>
